<compile_context>
chip_gen: v7x
topology: tpu7x:2x2x1
jax: 0.10.0
libtpu: 0.0.40
codegen_flags: <defaults>
</compile_context>

<pallas_src>
import functools

import jax
import jax.numpy as jnp
from jax import lax
from jax.experimental import pallas as pl
from jax.experimental.pallas import tpu as pltpu

_LANES = 128
_SUBLANES = 8


# ----------------------------------------------------------------------------
# Fused kernel factory: all LSTM layers + FC in one kernel invocation.
# ----------------------------------------------------------------------------
def _make_fused_kernel(num_layers, T, B, B_pad, H, O_pad):
    """Kernel ref layout (positional):
      inputs : x2d (T*B_pad, D_in),
               [w_ih_t (D_l, 4H), w_hh_t (H, 4H), bias (1, 4H)] * num_layers
                 (gate-column order [i, f, o, g], bias = b_ih + b_hh),
               fc_w_t (B*H, O_pad), fc_b (1, O_pad)
      outputs: out (T, O_pad)
      scratch: gates_scr (T*B_pad, 4H), act_scr (T*B_pad, H)
    """
    G = 4 * H

    def kernel(*refs):
        x_ref = refs[0]
        layer_refs = refs[1:1 + 3 * num_layers]
        fc_w_ref = refs[1 + 3 * num_layers]
        fc_b_ref = refs[2 + 3 * num_layers]
        out_ref = refs[3 + 3 * num_layers]
        gates_scr = refs[4 + 3 * num_layers]   # (T*B_pad, 4H) hoisted projection
        act_scr = refs[5 + 3 * num_layers]     # (T*B_pad, H)  t-major layer output

        # Lane constant: 0.5 on the three sigmoid gates [i, f, o], 1.0 on g.
        # Lets ONE tanh pass per step produce all four nonlinearities.
        lane = lax.broadcasted_iota(jnp.int32, (1, G), 1)
        gate_scale = jnp.where(lane < 3 * H, jnp.float32(0.5), jnp.float32(1.0))

        unroll = True if T <= 32 else 8

        for layer in range(num_layers):
            w_ih = layer_refs[3 * layer][...]      # (D_l, 4H)
            w_hh = layer_refs[3 * layer + 1][...]  # (H, 4H)
            bias = layer_refs[3 * layer + 2][...]  # (1, 4H)

            # Hoisted input projection for ALL timesteps (bias folded in).
            src = x_ref[...] if layer == 0 else act_scr[...]
            gates_scr[...] = (
                jnp.dot(src, w_ih, preferred_element_type=jnp.float32) + bias
            )

            def step(t, carry, w_hh=w_hh):
                h, c = carry
                row0 = pl.multiple_of(t * B_pad, B_pad)       # aligned (8, 4H) slab
                gx = gates_scr[pl.ds(row0, B_pad), :]
                gates = gx + jnp.dot(h, w_hh, preferred_element_type=jnp.float32)

                # Single EUP pass over 4H lanes: sigmoid(x) = 0.5*(tanh(x/2)+1).
                t_all = jnp.tanh(gates * gate_scale)
                sig = t_all[:, :3 * H] * 0.5 + 0.5
                i_g = sig[:, 0 * H:1 * H]
                f_g = sig[:, 1 * H:2 * H]
                o_g = sig[:, 2 * H:3 * H]
                g_g = t_all[:, 3 * H:]

                c_new = f_g * c + i_g * g_g
                h_new = o_g * jnp.tanh(c_new)

                # One aligned (8, H) store per step (no per-row scatter).
                act_scr[pl.ds(row0, B_pad), :] = h_new
                return (h_new, c_new)

            h0 = jnp.zeros((B_pad, H), jnp.float32)
            c0 = jnp.zeros((B_pad, H), jnp.float32)
            lax.fori_loop(0, T, step, (h0, c0), unroll=unroll)

        # Dropout: identity (eval-mode nn.Dropout semantics).
        # FC over the (data_size*hidden_dim) features, read back with strided
        # slabs so nothing extra touches the recurrence critical path:
        #   out[t, :] = fc_b + sum_b act[t*B_pad + b, :] @ fc_w[b*H:(b+1)*H, :]
        acc = jnp.zeros((T, O_pad), jnp.float32) + fc_b_ref[...]
        for bb in range(B):
            rows = act_scr[pl.ds(bb, T, stride=B_pad), :]          # (T, H)
            acc = acc + jnp.dot(rows, fc_w_ref[bb * H:(bb + 1) * H, :],
                                preferred_element_type=jnp.float32)
        out_ref[...] = acc                                          # lane-dense (T, 128)

    return kernel


def _build_pallas_forward(num_layers, T, B, B_pad, H, O_pad, D, n_in):
    kernel = _make_fused_kernel(num_layers, T, B, B_pad, H, O_pad)
    G = 4 * H
    # Rough resident-VMEM estimate (inputs + scratch + output + weights), with
    # headroom; clamped so the tiny test case keeps the default scoped limit.
    est_bytes = 4 * (T * B_pad * (D + G + H) + T * O_pad
                     + num_layers * (max(D, H) * G + H * G + G) + B * H * O_pad)
    vmem_limit = int(min(max(2 * est_bytes + (8 << 20), 32 << 20), 100 << 20))
    return pl.pallas_call(
        kernel,
        out_shape=jax.ShapeDtypeStruct((T, O_pad), jnp.float32),
        in_specs=[pl.BlockSpec(memory_space=pltpu.MemorySpace.VMEM)] * n_in,
        out_specs=pl.BlockSpec(memory_space=pltpu.MemorySpace.VMEM),
        scratch_shapes=[
            pltpu.VMEM((T * B_pad, G), jnp.float32),   # hoisted gate projections
            pltpu.VMEM((T * B_pad, H), jnp.float32),   # layer activations (t-major)
        ],
        compiler_params=pltpu.CompilerParams(vmem_limit_bytes=vmem_limit),
    )


# ----------------------------------------------------------------------------
# Module forward.
# ----------------------------------------------------------------------------
@functools.partial(jax.jit, static_argnames=("data_size", "hidden_dim"))
def eeg_lstm_building_block(x, params, *, data_size, hidden_dim):
    T, B, D = x.shape
    # The PyTorch reshape(T, data_size*hidden_dim) is only valid if B == data_size.
    assert B == data_size, "reshape(T, data_size*hidden_dim) requires batch == data_size"
    H = hidden_dim
    num_layers = len(params["lstm"])
    O = params["fc_w_t"].shape[1]
    O_pad = _LANES
    B_pad = -(-B // _SUBLANES) * _SUBLANES

    # Zero-pad batch rows to a full sublane group per timestep (aligned vregs).
    x_p = jnp.pad(x.astype(jnp.float32), ((0, 0), (0, B_pad - B), (0, 0)))
    x2d = x_p.reshape(T * B_pad, D)

    # Offline gate-column reorder: PyTorch [i, f, g, o] -> kernel [i, f, o, g].
    perm = jnp.concatenate([jnp.arange(0, 2 * H),
                            jnp.arange(3 * H, 4 * H),
                            jnp.arange(2 * H, 3 * H)])
    args = [x2d]
    for (w_ih_t, w_hh_t, b) in params["lstm"]:
        args += [w_ih_t[:, perm], w_hh_t[:, perm], b[:, perm]]

    # Pad FC output lanes to 128 (unmasked stores in-kernel), slice back below.
    fc_w_p = jnp.pad(params["fc_w_t"], ((0, 0), (0, O_pad - O)))
    fc_b_p = jnp.pad(params["fc_b"], ((0, 0), (0, O_pad - O)))
    args += [fc_w_p, fc_b_p]

    call = _build_pallas_forward(num_layers, T, B, B_pad, H, O_pad, D, len(args))
    out = call(*args)          # (T, 128)
    return out[:, :O]          # (T, 4)


def init_params(key, num_inputs, hidden_dim, num_layers, data_size):
    # Deterministic init mirroring PyTorch's uniform(-1/sqrt(H), 1/sqrt(H)).
    bound = 1.0 / jnp.sqrt(jnp.float32(hidden_dim))
    lstm_params = []
    for layer in range(num_layers):
        d_in = num_inputs if layer == 0 else hidden_dim
        key, k1, k2, k3, k4 = jax.random.split(key, 5)
        w_ih = jax.random.uniform(k1, (4 * hidden_dim, d_in), jnp.float32, -bound, bound)
        w_hh = jax.random.uniform(k2, (4 * hidden_dim, hidden_dim), jnp.float32, -bound, bound)
        b_ih = jax.random.uniform(k3, (4 * hidden_dim,), jnp.float32, -bound, bound)
        b_hh = jax.random.uniform(k4, (4 * hidden_dim,), jnp.float32, -bound, bound)
        lstm_params.append((w_ih.T, w_hh.T, (b_ih + b_hh).reshape(1, -1)))
    feat = data_size * hidden_dim
    fbound = 1.0 / jnp.sqrt(jnp.float32(feat))
    key, k5, k6 = jax.random.split(key, 3)
    fc_w = jax.random.uniform(k5, (4, feat), jnp.float32, -fbound, fbound)
    fc_b = jax.random.uniform(k6, (4,), jnp.float32, -fbound, fbound)
    return {"lstm": lstm_params, "fc_w_t": fc_w.T, "fc_b": fc_b.reshape(1, -1)}


# Pure-JAX reference (PyTorch gate order) for verification.
def _reference(x, params, data_size, hidden_dim):
    out = x
    for (w_ih_t, w_hh_t, b) in params["lstm"]:
        T, B, _ = out.shape
        H = hidden_dim

        def step(carry, x_t):
            h, c = carry
            gates = x_t @ w_ih_t + h @ w_hh_t + b
            i = jax.nn.sigmoid(gates[:, 0 * H:1 * H])
            f = jax.nn.sigmoid(gates[:, 1 * H:2 * H])
            g = jnp.tanh(gates[:, 2 * H:3 * H])
            o = jax.nn.sigmoid(gates[:, 3 * H:4 * H])
            c = f * c + i * g
            h = o * jnp.tanh(c)
            return (h, c), h

        init = (jnp.zeros((B, H), jnp.float32), jnp.zeros((B, H), jnp.float32))
        _, out = lax.scan(step, init, out)
    T = out.shape[0]
    out2d = out.reshape(T, data_size * hidden_dim)
    return out2d @ params["fc_w_t"] + params["fc_b"]


if __name__ == "__main__":
    # data_size must equal the batch dim for the reshape in forward() to be
    # valid (as in the PyTorch module).
    T, data_size, num_inputs, hidden_dim, num_layers = 8, 4, 16, 32, 2
    dropout = 0.5  # identity at inference

    key = jax.random.PRNGKey(0)
    key, kx = jax.random.split(key)
    x = jax.random.normal(kx, (T, data_size, num_inputs), jnp.float32)
    params = init_params(key, num_inputs, hidden_dim, num_layers, data_size)

    out = eeg_lstm_building_block(x, params, data_size=data_size, hidden_dim=hidden_dim)
    out = jax.block_until_ready(out)

    ref = _reference(x, params, data_size, hidden_dim)
    assert out.shape == (T, 4)
    assert jnp.allclose(out, ref, atol=1e-4, rtol=1e-4), float(jnp.max(jnp.abs(out - ref)))

    print("KERNEL_OK")
</pallas_src>

<mosaic_0001>
module attributes {stable_mosaic.version = 11 : i64} {
  func.func @kernel(%arg0: memref<64x16xf32, #tpu.memory_space<vmem>>, %arg1: memref<16x128xf32, #tpu.memory_space<vmem>>, %arg2: memref<32x128xf32, #tpu.memory_space<vmem>>, %arg3: memref<1x128xf32, #tpu.memory_space<vmem>>, %arg4: memref<32x128xf32, #tpu.memory_space<vmem>>, %arg5: memref<32x128xf32, #tpu.memory_space<vmem>>, %arg6: memref<1x128xf32, #tpu.memory_space<vmem>>, %arg7: memref<128x128xf32, #tpu.memory_space<vmem>>, %arg8: memref<1x128xf32, #tpu.memory_space<vmem>>, %arg9: memref<8x128xf32, #tpu.memory_space<vmem>>, %arg10: memref<64x128xf32, #tpu.memory_space<vmem>>, %arg11: memref<64x32xf32, #tpu.memory_space<vmem>>) attributes {dimension_semantics = [], scalar_prefetch = 0 : i64, scratch_operands = 2 : i64, tpu.core_type = #tpu.core_type<tc>} {
    %0 = tpu.iota {dimensions = array<i32: 1>} : vector<1x128xi32>
    %c96_i32 = arith.constant 96 : i32
    %1 = vector.broadcast %c96_i32 : i32 to vector<1x128xi32>
    %2 = arith.cmpi slt, %0, %1 : vector<1x128xi32>
    %cst = arith.constant 5.000000e-01 : f32
    %cst_0 = arith.constant 1.000000e+00 : f32
    %3 = vector.broadcast %cst : f32 to vector<1x128xf32>
    %4 = vector.broadcast %cst_0 : f32 to vector<1x128xf32>
    %5 = arith.select %2, %3, %4 : vector<1x128xi1>, vector<1x128xf32>
    %c0 = arith.constant 0 : index
    %c0_1 = arith.constant 0 : index
    %6 = vector.load %arg1[%c0, %c0_1] : memref<16x128xf32, #tpu.memory_space<vmem>>, vector<16x128xf32>
    %c0_2 = arith.constant 0 : index
    %c0_3 = arith.constant 0 : index
    %7 = vector.load %arg2[%c0_2, %c0_3] : memref<32x128xf32, #tpu.memory_space<vmem>>, vector<32x128xf32>
    %c0_4 = arith.constant 0 : index
    %c0_5 = arith.constant 0 : index
    %8 = vector.load %arg3[%c0_4, %c0_5] : memref<1x128xf32, #tpu.memory_space<vmem>>, vector<1x128xf32>
    %c0_6 = arith.constant 0 : index
    %c0_7 = arith.constant 0 : index
    %9 = vector.load %arg0[%c0_6, %c0_7] : memref<64x16xf32, #tpu.memory_space<vmem>>, vector<64x16xf32>
    %cst_8 = arith.constant dense<0.000000e+00> : vector<64x128xf32>
    %10 = tpu.matmul %9, %6, %cst_8 {dimension_numbers = #tpu.dot_dimension_numbers<[1], [0], [0], [1], [0, 0, 1, 1], [], []>} : vector<64x16xf32>, vector<16x128xf32>, vector<64x128xf32> -> vector<64x128xf32>
    %11 = vector.broadcast %8 : vector<1x128xf32> to vector<64x128xf32>
    %12 = arith.addf %10, %11 : vector<64x128xf32>
    %c0_9 = arith.constant 0 : index
    %c0_10 = arith.constant 0 : index
    %13 = vector.load %arg10[%c0_9, %c0_10] : memref<64x128xf32, #tpu.memory_space<vmem>>, vector<64x128xf32>
    tpu.vector_store %arg10[%c0_9, %c0_10], %12 {strides = array<i32>} : memref<64x128xf32, #tpu.memory_space<vmem>>, vector<64x128xf32>,
    %cst_11 = arith.constant 0.000000e+00 : f32
    %14 = vector.broadcast %cst_11 : f32 to vector<8x32xf32>
    %cst_12 = arith.constant 0.000000e+00 : f32
    %15 = vector.broadcast %cst_12 : f32 to vector<8x32xf32>
    %c0_i32 = arith.constant 0 : i32
    %c8_i32 = arith.constant 8 : i32
    %16 = arith.muli %c0_i32, %c8_i32 : i32
    %17 = tpu.assume_multiple %16, 8 : i32
    %18 = arith.index_cast %17 : i32 to index
    %c0_13 = arith.constant 0 : index
    %19 = vector.load %arg10[%18, %c0_13] : memref<64x128xf32, #tpu.memory_space<vmem>>, vector<8x128xf32>
    %cst_14 = arith.constant dense<0.000000e+00> : vector<8x128xf32>
    %20 = tpu.matmul %14, %7, %cst_14 {dimension_numbers = #tpu.dot_dimension_numbers<[1], [0], [0], [1], [0, 0, 1, 1], [], []>} : vector<8x32xf32>, vector<32x128xf32>, vector<8x128xf32> -> vector<8x128xf32>
    %21 = arith.addf %19, %20 : vector<8x128xf32>
    %22 = vector.broadcast %5 : vector<1x128xf32> to vector<8x128xf32>
    %23 = arith.mulf %21, %22 : vector<8x128xf32>
    %24 = math.tanh %23 : vector<8x128xf32>
    %25 = vector.extract_strided_slice %24 {offsets = [0, 0], sizes = [8, 96], strides = [1, 1]} : vector<8x128xf32> to vector<8x96xf32>
    %cst_15 = arith.constant 5.000000e-01 : f32
    %26 = vector.broadcast %cst_15 : f32 to vector<8x96xf32>
    %27 = arith.mulf %25, %26 : vector<8x96xf32>
    %cst_16 = arith.constant 5.000000e-01 : f32
    %28 = vector.broadcast %cst_16 : f32 to vector<8x96xf32>
    %29 = arith.addf %27, %28 : vector<8x96xf32>
    %30 = vector.extract_strided_slice %29 {offsets = [0, 0], sizes = [8, 32], strides = [1, 1]} : vector<8x96xf32> to vector<8x32xf32>
    %31 = vector.extract_strided_slice %29 {offsets = [0, 32], sizes = [8, 32], strides = [1, 1]} : vector<8x96xf32> to vector<8x32xf32>
    %32 = vector.extract_strided_slice %29 {offsets = [0, 64], sizes = [8, 32], strides = [1, 1]} : vector<8x96xf32> to vector<8x32xf32>
    %33 = vector.extract_strided_slice %24 {offsets = [0, 96], sizes = [8, 32], strides = [1, 1]} : vector<8x128xf32> to vector<8x32xf32>
    %34 = arith.mulf %31, %15 : vector<8x32xf32>
    %35 = arith.mulf %30, %33 : vector<8x32xf32>
    %36 = arith.addf %34, %35 : vector<8x32xf32>
    %37 = math.tanh %36 : vector<8x32xf32>
    %38 = arith.mulf %32, %37 : vector<8x32xf32>
    %39 = arith.index_cast %17 : i32 to index
    %c0_17 = arith.constant 0 : index
    %40 = vector.load %arg11[%39, %c0_17] : memref<64x32xf32, #tpu.memory_space<vmem>>, vector<8x32xf32>
    tpu.vector_store %arg11[%39, %c0_17], %38 {strides = array<i32>} : memref<64x32xf32, #tpu.memory_space<vmem>>, vector<8x32xf32>,
    %c1_i32 = arith.constant 1 : i32
    %c8_i32_18 = arith.constant 8 : i32
    %41 = arith.muli %c1_i32, %c8_i32_18 : i32
    %42 = tpu.assume_multiple %41, 8 : i32
    %43 = arith.index_cast %42 : i32 to index
    %c0_19 = arith.constant 0 : index
    %44 = vector.load %arg10[%43, %c0_19] : memref<64x128xf32, #tpu.memory_space<vmem>>, vector<8x128xf32>
    %cst_20 = arith.constant dense<0.000000e+00> : vector<8x128xf32>
    %45 = tpu.matmul %38, %7, %cst_20 {dimension_numbers = #tpu.dot_dimension_numbers<[1], [0], [0], [1], [0, 0, 1, 1], [], []>} : vector<8x32xf32>, vector<32x128xf32>, vector<8x128xf32> -> vector<8x128xf32>
    %46 = arith.addf %44, %45 : vector<8x128xf32>
    %47 = vector.broadcast %5 : vector<1x128xf32> to vector<8x128xf32>
    %48 = arith.mulf %46, %47 : vector<8x128xf32>
    %49 = math.tanh %48 : vector<8x128xf32>
    %50 = vector.extract_strided_slice %49 {offsets = [0, 0], sizes = [8, 96], strides = [1, 1]} : vector<8x128xf32> to vector<8x96xf32>
    %cst_21 = arith.constant 5.000000e-01 : f32
    %51 = vector.broadcast %cst_21 : f32 to vector<8x96xf32>
    %52 = arith.mulf %50, %51 : vector<8x96xf32>
    %cst_22 = arith.constant 5.000000e-01 : f32
    %53 = vector.broadcast %cst_22 : f32 to vector<8x96xf32>
    %54 = arith.addf %52, %53 : vector<8x96xf32>
    %55 = vector.extract_strided_slice %54 {offsets = [0, 0], sizes = [8, 32], strides = [1, 1]} : vector<8x96xf32> to vector<8x32xf32>
    %56 = vector.extract_strided_slice %54 {offsets = [0, 32], sizes = [8, 32], strides = [1, 1]} : vector<8x96xf32> to vector<8x32xf32>
    %57 = vector.extract_strided_slice %54 {offsets = [0, 64], sizes = [8, 32], strides = [1, 1]} : vector<8x96xf32> to vector<8x32xf32>
    %58 = vector.extract_strided_slice %49 {offsets = [0, 96], sizes = [8, 32], strides = [1, 1]} : vector<8x128xf32> to vector<8x32xf32>
    %59 = arith.mulf %56, %36 : vector<8x32xf32>
    %60 = arith.mulf %55, %58 : vector<8x32xf32>
    %61 = arith.addf %59, %60 : vector<8x32xf32>
    %62 = math.tanh %61 : vector<8x32xf32>
    %63 = arith.mulf %57, %62 : vector<8x32xf32>
    %64 = arith.index_cast %42 : i32 to index
    %c0_23 = arith.constant 0 : index
    %65 = vector.load %arg11[%64, %c0_23] : memref<64x32xf32, #tpu.memory_space<vmem>>, vector<8x32xf32>
    tpu.vector_store %arg11[%64, %c0_23], %63 {strides = array<i32>} : memref<64x32xf32, #tpu.memory_space<vmem>>, vector<8x32xf32>,
    %c2_i32 = arith.constant 2 : i32
    %c8_i32_24 = arith.constant 8 : i32
    %66 = arith.muli %c2_i32, %c8_i32_24 : i32
    %67 = tpu.assume_multiple %66, 8 : i32
    %68 = arith.index_cast %67 : i32 to index
    %c0_25 = arith.constant 0 : index
    %69 = vector.load %arg10[%68, %c0_25] : memref<64x128xf32, #tpu.memory_space<vmem>>, vector<8x128xf32>
    %cst_26 = arith.constant dense<0.000000e+00> : vector<8x128xf32>
    %70 = tpu.matmul %63, %7, %cst_26 {dimension_numbers = #tpu.dot_dimension_numbers<[1], [0], [0], [1], [0, 0, 1, 1], [], []>} : vector<8x32xf32>, vector<32x128xf32>, vector<8x128xf32> -> vector<8x128xf32>
    %71 = arith.addf %69, %70 : vector<8x128xf32>
    %72 = vector.broadcast %5 : vector<1x128xf32> to vector<8x128xf32>
    %73 = arith.mulf %71, %72 : vector<8x128xf32>
    %74 = math.tanh %73 : vector<8x128xf32>
    %75 = vector.extract_strided_slice %74 {offsets = [0, 0], sizes = [8, 96], strides = [1, 1]} : vector<8x128xf32> to vector<8x96xf32>
    %cst_27 = arith.constant 5.000000e-01 : f32
    %76 = vector.broadcast %cst_27 : f32 to vector<8x96xf32>
    %77 = arith.mulf %75, %76 : vector<8x96xf32>
    %cst_28 = arith.constant 5.000000e-01 : f32
    %78 = vector.broadcast %cst_28 : f32 to vector<8x96xf32>
    %79 = arith.addf %77, %78 : vector<8x96xf32>
    %80 = vector.extract_strided_slice %79 {offsets = [0, 0], sizes = [8, 32], strides = [1, 1]} : vector<8x96xf32> to vector<8x32xf32>
    %81 = vector.extract_strided_slice %79 {offsets = [0, 32], sizes = [8, 32], strides = [1, 1]} : vector<8x96xf32> to vector<8x32xf32>
    %82 = vector.extract_strided_slice %79 {offsets = [0, 64], sizes = [8, 32], strides = [1, 1]} : vector<8x96xf32> to vector<8x32xf32>
    %83 = vector.extract_strided_slice %74 {offsets = [0, 96], sizes = [8, 32], strides = [1, 1]} : vector<8x128xf32> to vector<8x32xf32>
    %84 = arith.mulf %81, %61 : vector<8x32xf32>
    %85 = arith.mulf %80, %83 : vector<8x32xf32>
    %86 = arith.addf %84, %85 : vector<8x32xf32>
    %87 = math.tanh %86 : vector<8x32xf32>
    %88 = arith.mulf %82, %87 : vector<8x32xf32>
    %89 = arith.index_cast %67 : i32 to index
    %c0_29 = arith.constant 0 : index
    %90 = vector.load %arg11[%89, %c0_29] : memref<64x32xf32, #tpu.memory_space<vmem>>, vector<8x32xf32>
    tpu.vector_store %arg11[%89, %c0_29], %88 {strides = array<i32>} : memref<64x32xf32, #tpu.memory_space<vmem>>, vector<8x32xf32>,
    %c3_i32 = arith.constant 3 : i32
    %c8_i32_30 = arith.constant 8 : i32
    %91 = arith.muli %c3_i32, %c8_i32_30 : i32
    %92 = tpu.assume_multiple %91, 8 : i32
    %93 = arith.index_cast %92 : i32 to index
    %c0_31 = arith.constant 0 : index
    %94 = vector.load %arg10[%93, %c0_31] : memref<64x128xf32, #tpu.memory_space<vmem>>, vector<8x128xf32>
    %cst_32 = arith.constant dense<0.000000e+00> : vector<8x128xf32>
    %95 = tpu.matmul %88, %7, %cst_32 {dimension_numbers = #tpu.dot_dimension_numbers<[1], [0], [0], [1], [0, 0, 1, 1], [], []>} : vector<8x32xf32>, vector<32x128xf32>, vector<8x128xf32> -> vector<8x128xf32>
    %96 = arith.addf %94, %95 : vector<8x128xf32>
    %97 = vector.broadcast %5 : vector<1x128xf32> to vector<8x128xf32>
    %98 = arith.mulf %96, %97 : vector<8x128xf32>
    %99 = math.tanh %98 : vector<8x128xf32>
    %100 = vector.extract_strided_slice %99 {offsets = [0, 0], sizes = [8, 96], strides = [1, 1]} : vector<8x128xf32> to vector<8x96xf32>
    %cst_33 = arith.constant 5.000000e-01 : f32
    %101 = vector.broadcast %cst_33 : f32 to vector<8x96xf32>
    %102 = arith.mulf %100, %101 : vector<8x96xf32>
    %cst_34 = arith.constant 5.000000e-01 : f32
    %103 = vector.broadcast %cst_34 : f32 to vector<8x96xf32>
    %104 = arith.addf %102, %103 : vector<8x96xf32>
    %105 = vector.extract_strided_slice %104 {offsets = [0, 0], sizes = [8, 32], strides = [1, 1]} : vector<8x96xf32> to vector<8x32xf32>
    %106 = vector.extract_strided_slice %104 {offsets = [0, 32], sizes = [8, 32], strides = [1, 1]} : vector<8x96xf32> to vector<8x32xf32>
    %107 = vector.extract_strided_slice %104 {offsets = [0, 64], sizes = [8, 32], strides = [1, 1]} : vector<8x96xf32> to vector<8x32xf32>
    %108 = vector.extract_strided_slice %99 {offsets = [0, 96], sizes = [8, 32], strides = [1, 1]} : vector<8x128xf32> to vector<8x32xf32>
    %109 = arith.mulf %106, %86 : vector<8x32xf32>
    %110 = arith.mulf %105, %108 : vector<8x32xf32>
    %111 = arith.addf %109, %110 : vector<8x32xf32>
    %112 = math.tanh %111 : vector<8x32xf32>
    %113 = arith.mulf %107, %112 : vector<8x32xf32>
    %114 = arith.index_cast %92 : i32 to index
    %c0_35 = arith.constant 0 : index
    %115 = vector.load %arg11[%114, %c0_35] : memref<64x32xf32, #tpu.memory_space<vmem>>, vector<8x32xf32>
    tpu.vector_store %arg11[%114, %c0_35], %113 {strides = array<i32>} : memref<64x32xf32, #tpu.memory_space<vmem>>, vector<8x32xf32>,
    %c4_i32 = arith.constant 4 : i32
    %c8_i32_36 = arith.constant 8 : i32
    %116 = arith.muli %c4_i32, %c8_i32_36 : i32
    %117 = tpu.assume_multiple %116, 8 : i32
    %118 = arith.index_cast %117 : i32 to index
    %c0_37 = arith.constant 0 : index
    %119 = vector.load %arg10[%118, %c0_37] : memref<64x128xf32, #tpu.memory_space<vmem>>, vector<8x128xf32>
    %cst_38 = arith.constant dense<0.000000e+00> : vector<8x128xf32>
    %120 = tpu.matmul %113, %7, %cst_38 {dimension_numbers = #tpu.dot_dimension_numbers<[1], [0], [0], [1], [0, 0, 1, 1], [], []>} : vector<8x32xf32>, vector<32x128xf32>, vector<8x128xf32> -> vector<8x128xf32>
    %121 = arith.addf %119, %120 : vector<8x128xf32>
    %122 = vector.broadcast %5 : vector<1x128xf32> to vector<8x128xf32>
    %123 = arith.mulf %121, %122 : vector<8x128xf32>
    %124 = math.tanh %123 : vector<8x128xf32>
    %125 = vector.extract_strided_slice %124 {offsets = [0, 0], sizes = [8, 96], strides = [1, 1]} : vector<8x128xf32> to vector<8x96xf32>
    %cst_39 = arith.constant 5.000000e-01 : f32
    %126 = vector.broadcast %cst_39 : f32 to vector<8x96xf32>
    %127 = arith.mulf %125, %126 : vector<8x96xf32>
    %cst_40 = arith.constant 5.000000e-01 : f32
    %128 = vector.broadcast %cst_40 : f32 to vector<8x96xf32>
    %129 = arith.addf %127, %128 : vector<8x96xf32>
    %130 = vector.extract_strided_slice %129 {offsets = [0, 0], sizes = [8, 32], strides = [1, 1]} : vector<8x96xf32> to vector<8x32xf32>
    %131 = vector.extract_strided_slice %129 {offsets = [0, 32], sizes = [8, 32], strides = [1, 1]} : vector<8x96xf32> to vector<8x32xf32>
    %132 = vector.extract_strided_slice %129 {offsets = [0, 64], sizes = [8, 32], strides = [1, 1]} : vector<8x96xf32> to vector<8x32xf32>
    %133 = vector.extract_strided_slice %124 {offsets = [0, 96], sizes = [8, 32], strides = [1, 1]} : vector<8x128xf32> to vector<8x32xf32>
    %134 = arith.mulf %131, %111 : vector<8x32xf32>
    %135 = arith.mulf %130, %133 : vector<8x32xf32>
    %136 = arith.addf %134, %135 : vector<8x32xf32>
    %137 = math.tanh %136 : vector<8x32xf32>
    %138 = arith.mulf %132, %137 : vector<8x32xf32>
    %139 = arith.index_cast %117 : i32 to index
    %c0_41 = arith.constant 0 : index
    %140 = vector.load %arg11[%139, %c0_41] : memref<64x32xf32, #tpu.memory_space<vmem>>, vector<8x32xf32>
    tpu.vector_store %arg11[%139, %c0_41], %138 {strides = array<i32>} : memref<64x32xf32, #tpu.memory_space<vmem>>, vector<8x32xf32>,
    %c5_i32 = arith.constant 5 : i32
    %c8_i32_42 = arith.constant 8 : i32
    %141 = arith.muli %c5_i32, %c8_i32_42 : i32
    %142 = tpu.assume_multiple %141, 8 : i32
    %143 = arith.index_cast %142 : i32 to index
    %c0_43 = arith.constant 0 : index
    %144 = vector.load %arg10[%143, %c0_43] : memref<64x128xf32, #tpu.memory_space<vmem>>, vector<8x128xf32>
    %cst_44 = arith.constant dense<0.000000e+00> : vector<8x128xf32>
    %145 = tpu.matmul %138, %7, %cst_44 {dimension_numbers = #tpu.dot_dimension_numbers<[1], [0], [0], [1], [0, 0, 1, 1], [], []>} : vector<8x32xf32>, vector<32x128xf32>, vector<8x128xf32> -> vector<8x128xf32>
    %146 = arith.addf %144, %145 : vector<8x128xf32>
    %147 = vector.broadcast %5 : vector<1x128xf32> to vector<8x128xf32>
    %148 = arith.mulf %146, %147 : vector<8x128xf32>
    %149 = math.tanh %148 : vector<8x128xf32>
    %150 = vector.extract_strided_slice %149 {offsets = [0, 0], sizes = [8, 96], strides = [1, 1]} : vector<8x128xf32> to vector<8x96xf32>
    %cst_45 = arith.constant 5.000000e-01 : f32
    %151 = vector.broadcast %cst_45 : f32 to vector<8x96xf32>
    %152 = arith.mulf %150, %151 : vector<8x96xf32>
    %cst_46 = arith.constant 5.000000e-01 : f32
    %153 = vector.broadcast %cst_46 : f32 to vector<8x96xf32>
    %154 = arith.addf %152, %153 : vector<8x96xf32>
    %155 = vector.extract_strided_slice %154 {offsets = [0, 0], sizes = [8, 32], strides = [1, 1]} : vector<8x96xf32> to vector<8x32xf32>
    %156 = vector.extract_strided_slice %154 {offsets = [0, 32], sizes = [8, 32], strides = [1, 1]} : vector<8x96xf32> to vector<8x32xf32>
    %157 = vector.extract_strided_slice %154 {offsets = [0, 64], sizes = [8, 32], strides = [1, 1]} : vector<8x96xf32> to vector<8x32xf32>
    %158 = vector.extract_strided_slice %149 {offsets = [0, 96], sizes = [8, 32], strides = [1, 1]} : vector<8x128xf32> to vector<8x32xf32>
    %159 = arith.mulf %156, %136 : vector<8x32xf32>
    %160 = arith.mulf %155, %158 : vector<8x32xf32>
    %161 = arith.addf %159, %160 : vector<8x32xf32>
    %162 = math.tanh %161 : vector<8x32xf32>
    %163 = arith.mulf %157, %162 : vector<8x32xf32>
    %164 = arith.index_cast %142 : i32 to index
    %c0_47 = arith.constant 0 : index
    %165 = vector.load %arg11[%164, %c0_47] : memref<64x32xf32, #tpu.memory_space<vmem>>, vector<8x32xf32>
    tpu.vector_store %arg11[%164, %c0_47], %163 {strides = array<i32>} : memref<64x32xf32, #tpu.memory_space<vmem>>, vector<8x32xf32>,
    %c6_i32 = arith.constant 6 : i32
    %c8_i32_48 = arith.constant 8 : i32
    %166 = arith.muli %c6_i32, %c8_i32_48 : i32
    %167 = tpu.assume_multiple %166, 8 : i32
    %168 = arith.index_cast %167 : i32 to index
    %c0_49 = arith.constant 0 : index
    %169 = vector.load %arg10[%168, %c0_49] : memref<64x128xf32, #tpu.memory_space<vmem>>, vector<8x128xf32>
    %cst_50 = arith.constant dense<0.000000e+00> : vector<8x128xf32>
    %170 = tpu.matmul %163, %7, %cst_50 {dimension_numbers = #tpu.dot_dimension_numbers<[1], [0], [0], [1], [0, 0, 1, 1], [], []>} : vector<8x32xf32>, vector<32x128xf32>, vector<8x128xf32> -> vector<8x128xf32>
    %171 = arith.addf %169, %170 : vector<8x128xf32>
    %172 = vector.broadcast %5 : vector<1x128xf32> to vector<8x128xf32>
    %173 = arith.mulf %171, %172 : vector<8x128xf32>
    %174 = math.tanh %173 : vector<8x128xf32>
    %175 = vector.extract_strided_slice %174 {offsets = [0, 0], sizes = [8, 96], strides = [1, 1]} : vector<8x128xf32> to vector<8x96xf32>
    %cst_51 = arith.constant 5.000000e-01 : f32
    %176 = vector.broadcast %cst_51 : f32 to vector<8x96xf32>
    %177 = arith.mulf %175, %176 : vector<8x96xf32>
    %cst_52 = arith.constant 5.000000e-01 : f32
    %178 = vector.broadcast %cst_52 : f32 to vector<8x96xf32>
    %179 = arith.addf %177, %178 : vector<8x96xf32>
    %180 = vector.extract_strided_slice %179 {offsets = [0, 0], sizes = [8, 32], strides = [1, 1]} : vector<8x96xf32> to vector<8x32xf32>
    %181 = vector.extract_strided_slice %179 {offsets = [0, 32], sizes = [8, 32], strides = [1, 1]} : vector<8x96xf32> to vector<8x32xf32>
    %182 = vector.extract_strided_slice %179 {offsets = [0, 64], sizes = [8, 32], strides = [1, 1]} : vector<8x96xf32> to vector<8x32xf32>
    %183 = vector.extract_strided_slice %174 {offsets = [0, 96], sizes = [8, 32], strides = [1, 1]} : vector<8x128xf32> to vector<8x32xf32>
    %184 = arith.mulf %181, %161 : vector<8x32xf32>
    %185 = arith.mulf %180, %183 : vector<8x32xf32>
    %186 = arith.addf %184, %185 : vector<8x32xf32>
    %187 = math.tanh %186 : vector<8x32xf32>
    %188 = arith.mulf %182, %187 : vector<8x32xf32>
    %189 = arith.index_cast %167 : i32 to index
    %c0_53 = arith.constant 0 : index
    %190 = vector.load %arg11[%189, %c0_53] : memref<64x32xf32, #tpu.memory_space<vmem>>, vector<8x32xf32>
    tpu.vector_store %arg11[%189, %c0_53], %188 {strides = array<i32>} : memref<64x32xf32, #tpu.memory_space<vmem>>, vector<8x32xf32>,
    %c7_i32 = arith.constant 7 : i32
    %c8_i32_54 = arith.constant 8 : i32
    %191 = arith.muli %c7_i32, %c8_i32_54 : i32
    %192 = tpu.assume_multiple %191, 8 : i32
    %193 = arith.index_cast %192 : i32 to index
    %c0_55 = arith.constant 0 : index
    %194 = vector.load %arg10[%193, %c0_55] : memref<64x128xf32, #tpu.memory_space<vmem>>, vector<8x128xf32>
    %cst_56 = arith.constant dense<0.000000e+00> : vector<8x128xf32>
    %195 = tpu.matmul %188, %7, %cst_56 {dimension_numbers = #tpu.dot_dimension_numbers<[1], [0], [0], [1], [0, 0, 1, 1], [], []>} : vector<8x32xf32>, vector<32x128xf32>, vector<8x128xf32> -> vector<8x128xf32>
    %196 = arith.addf %194, %195 : vector<8x128xf32>
    %197 = vector.broadcast %5 : vector<1x128xf32> to vector<8x128xf32>
    %198 = arith.mulf %196, %197 : vector<8x128xf32>
    %199 = math.tanh %198 : vector<8x128xf32>
    %200 = vector.extract_strided_slice %199 {offsets = [0, 0], sizes = [8, 96], strides = [1, 1]} : vector<8x128xf32> to vector<8x96xf32>
    %cst_57 = arith.constant 5.000000e-01 : f32
    %201 = vector.broadcast %cst_57 : f32 to vector<8x96xf32>
    %202 = arith.mulf %200, %201 : vector<8x96xf32>
    %cst_58 = arith.constant 5.000000e-01 : f32
    %203 = vector.broadcast %cst_58 : f32 to vector<8x96xf32>
    %204 = arith.addf %202, %203 : vector<8x96xf32>
    %205 = vector.extract_strided_slice %204 {offsets = [0, 0], sizes = [8, 32], strides = [1, 1]} : vector<8x96xf32> to vector<8x32xf32>
    %206 = vector.extract_strided_slice %204 {offsets = [0, 32], sizes = [8, 32], strides = [1, 1]} : vector<8x96xf32> to vector<8x32xf32>
    %207 = vector.extract_strided_slice %204 {offsets = [0, 64], sizes = [8, 32], strides = [1, 1]} : vector<8x96xf32> to vector<8x32xf32>
    %208 = vector.extract_strided_slice %199 {offsets = [0, 96], sizes = [8, 32], strides = [1, 1]} : vector<8x128xf32> to vector<8x32xf32>
    %209 = arith.mulf %206, %186 : vector<8x32xf32>
    %210 = arith.mulf %205, %208 : vector<8x32xf32>
    %211 = arith.addf %209, %210 : vector<8x32xf32>
    %212 = math.tanh %211 : vector<8x32xf32>
    %213 = arith.mulf %207, %212 : vector<8x32xf32>
    %214 = arith.index_cast %192 : i32 to index
    %c0_59 = arith.constant 0 : index
    %215 = vector.load %arg11[%214, %c0_59] : memref<64x32xf32, #tpu.memory_space<vmem>>, vector<8x32xf32>
    tpu.vector_store %arg11[%214, %c0_59], %213 {strides = array<i32>} : memref<64x32xf32, #tpu.memory_space<vmem>>, vector<8x32xf32>,
    %c8_i32_60 = arith.constant 8 : i32
    %c0_61 = arith.constant 0 : index
    %c0_62 = arith.constant 0 : index
    %216 = vector.load %arg4[%c0_61, %c0_62] : memref<32x128xf32, #tpu.memory_space<vmem>>, vector<32x128xf32>
    %c0_63 = arith.constant 0 : index
    %c0_64 = arith.constant 0 : index
    %217 = vector.load %arg5[%c0_63, %c0_64] : memref<32x128xf32, #tpu.memory_space<vmem>>, vector<32x128xf32>
    %c0_65 = arith.constant 0 : index
    %c0_66 = arith.constant 0 : index
    %218 = vector.load %arg6[%c0_65, %c0_66] : memref<1x128xf32, #tpu.memory_space<vmem>>, vector<1x128xf32>
    %c0_67 = arith.constant 0 : index
    %c0_68 = arith.constant 0 : index
    %219 = vector.load %arg11[%c0_67, %c0_68] : memref<64x32xf32, #tpu.memory_space<vmem>>, vector<64x32xf32>
    %cst_69 = arith.constant dense<0.000000e+00> : vector<64x128xf32>
    %220 = tpu.matmul %219, %216, %cst_69 {dimension_numbers = #tpu.dot_dimension_numbers<[1], [0], [0], [1], [0, 0, 1, 1], [], []>} : vector<64x32xf32>, vector<32x128xf32>, vector<64x128xf32> -> vector<64x128xf32>
    %221 = vector.broadcast %218 : vector<1x128xf32> to vector<64x128xf32>
    %222 = arith.addf %220, %221 : vector<64x128xf32>
    %c0_70 = arith.constant 0 : index
    %c0_71 = arith.constant 0 : index
    %223 = vector.load %arg10[%c0_70, %c0_71] : memref<64x128xf32, #tpu.memory_space<vmem>>, vector<64x128xf32>
    tpu.vector_store %arg10[%c0_70, %c0_71], %222 {strides = array<i32>} : memref<64x128xf32, #tpu.memory_space<vmem>>, vector<64x128xf32>,
    %cst_72 = arith.constant 0.000000e+00 : f32
    %224 = vector.broadcast %cst_72 : f32 to vector<8x32xf32>
    %cst_73 = arith.constant 0.000000e+00 : f32
    %225 = vector.broadcast %cst_73 : f32 to vector<8x32xf32>
    %c0_i32_74 = arith.constant 0 : i32
    %c8_i32_75 = arith.constant 8 : i32
    %226 = arith.muli %c0_i32_74, %c8_i32_75 : i32
    %227 = tpu.assume_multiple %226, 8 : i32
    %228 = arith.index_cast %227 : i32 to index
    %c0_76 = arith.constant 0 : index
    %229 = vector.load %arg10[%228, %c0_76] : memref<64x128xf32, #tpu.memory_space<vmem>>, vector<8x128xf32>
    %cst_77 = arith.constant dense<0.000000e+00> : vector<8x128xf32>
    %230 = tpu.matmul %224, %217, %cst_77 {dimension_numbers = #tpu.dot_dimension_numbers<[1], [0], [0], [1], [0, 0, 1, 1], [], []>} : vector<8x32xf32>, vector<32x128xf32>, vector<8x128xf32> -> vector<8x128xf32>
    %231 = arith.addf %229, %230 : vector<8x128xf32>
    %232 = vector.broadcast %5 : vector<1x128xf32> to vector<8x128xf32>
    %233 = arith.mulf %231, %232 : vector<8x128xf32>
    %234 = math.tanh %233 : vector<8x128xf32>
    %235 = vector.extract_strided_slice %234 {offsets = [0, 0], sizes = [8, 96], strides = [1, 1]} : vector<8x128xf32> to vector<8x96xf32>
    %cst_78 = arith.constant 5.000000e-01 : f32
    %236 = vector.broadcast %cst_78 : f32 to vector<8x96xf32>
    %237 = arith.mulf %235, %236 : vector<8x96xf32>
    %cst_79 = arith.constant 5.000000e-01 : f32
    %238 = vector.broadcast %cst_79 : f32 to vector<8x96xf32>
    %239 = arith.addf %237, %238 : vector<8x96xf32>
    %240 = vector.extract_strided_slice %239 {offsets = [0, 0], sizes = [8, 32], strides = [1, 1]} : vector<8x96xf32> to vector<8x32xf32>
    %241 = vector.extract_strided_slice %239 {offsets = [0, 32], sizes = [8, 32], strides = [1, 1]} : vector<8x96xf32> to vector<8x32xf32>
    %242 = vector.extract_strided_slice %239 {offsets = [0, 64], sizes = [8, 32], strides = [1, 1]} : vector<8x96xf32> to vector<8x32xf32>
    %243 = vector.extract_strided_slice %234 {offsets = [0, 96], sizes = [8, 32], strides = [1, 1]} : vector<8x128xf32> to vector<8x32xf32>
    %244 = arith.mulf %241, %225 : vector<8x32xf32>
    %245 = arith.mulf %240, %243 : vector<8x32xf32>
    %246 = arith.addf %244, %245 : vector<8x32xf32>
    %247 = math.tanh %246 : vector<8x32xf32>
    %248 = arith.mulf %242, %247 : vector<8x32xf32>
    %249 = arith.index_cast %227 : i32 to index
    %c0_80 = arith.constant 0 : index
    %250 = vector.load %arg11[%249, %c0_80] : memref<64x32xf32, #tpu.memory_space<vmem>>, vector<8x32xf32>
    tpu.vector_store %arg11[%249, %c0_80], %248 {strides = array<i32>} : memref<64x32xf32, #tpu.memory_space<vmem>>, vector<8x32xf32>,
    %c1_i32_81 = arith.constant 1 : i32
    %c8_i32_82 = arith.constant 8 : i32
    %251 = arith.muli %c1_i32_81, %c8_i32_82 : i32
    %252 = tpu.assume_multiple %251, 8 : i32
    %253 = arith.index_cast %252 : i32 to index
    %c0_83 = arith.constant 0 : index
    %254 = vector.load %arg10[%253, %c0_83] : memref<64x128xf32, #tpu.memory_space<vmem>>, vector<8x128xf32>
    %cst_84 = arith.constant dense<0.000000e+00> : vector<8x128xf32>
    %255 = tpu.matmul %248, %217, %cst_84 {dimension_numbers = #tpu.dot_dimension_numbers<[1], [0], [0], [1], [0, 0, 1, 1], [], []>} : vector<8x32xf32>, vector<32x128xf32>, vector<8x128xf32> -> vector<8x128xf32>
    %256 = arith.addf %254, %255 : vector<8x128xf32>
    %257 = vector.broadcast %5 : vector<1x128xf32> to vector<8x128xf32>
    %258 = arith.mulf %256, %257 : vector<8x128xf32>
    %259 = math.tanh %258 : vector<8x128xf32>
    %260 = vector.extract_strided_slice %259 {offsets = [0, 0], sizes = [8, 96], strides = [1, 1]} : vector<8x128xf32> to vector<8x96xf32>
    %cst_85 = arith.constant 5.000000e-01 : f32
    %261 = vector.broadcast %cst_85 : f32 to vector<8x96xf32>
    %262 = arith.mulf %260, %261 : vector<8x96xf32>
    %cst_86 = arith.constant 5.000000e-01 : f32
    %263 = vector.broadcast %cst_86 : f32 to vector<8x96xf32>
    %264 = arith.addf %262, %263 : vector<8x96xf32>
    %265 = vector.extract_strided_slice %264 {offsets = [0, 0], sizes = [8, 32], strides = [1, 1]} : vector<8x96xf32> to vector<8x32xf32>
    %266 = vector.extract_strided_slice %264 {offsets = [0, 32], sizes = [8, 32], strides = [1, 1]} : vector<8x96xf32> to vector<8x32xf32>
    %267 = vector.extract_strided_slice %264 {offsets = [0, 64], sizes = [8, 32], strides = [1, 1]} : vector<8x96xf32> to vector<8x32xf32>
    %268 = vector.extract_strided_slice %259 {offsets = [0, 96], sizes = [8, 32], strides = [1, 1]} : vector<8x128xf32> to vector<8x32xf32>
    %269 = arith.mulf %266, %246 : vector<8x32xf32>
    %270 = arith.mulf %265, %268 : vector<8x32xf32>
    %271 = arith.addf %269, %270 : vector<8x32xf32>
    %272 = math.tanh %271 : vector<8x32xf32>
    %273 = arith.mulf %267, %272 : vector<8x32xf32>
    %274 = arith.index_cast %252 : i32 to index
    %c0_87 = arith.constant 0 : index
    %275 = vector.load %arg11[%274, %c0_87] : memref<64x32xf32, #tpu.memory_space<vmem>>, vector<8x32xf32>
    tpu.vector_store %arg11[%274, %c0_87], %273 {strides = array<i32>} : memref<64x32xf32, #tpu.memory_space<vmem>>, vector<8x32xf32>,
    %c2_i32_88 = arith.constant 2 : i32
    %c8_i32_89 = arith.constant 8 : i32
    %276 = arith.muli %c2_i32_88, %c8_i32_89 : i32
    %277 = tpu.assume_multiple %276, 8 : i32
    %278 = arith.index_cast %277 : i32 to index
    %c0_90 = arith.constant 0 : index
    %279 = vector.load %arg10[%278, %c0_90] : memref<64x128xf32, #tpu.memory_space<vmem>>, vector<8x128xf32>
    %cst_91 = arith.constant dense<0.000000e+00> : vector<8x128xf32>
    %280 = tpu.matmul %273, %217, %cst_91 {dimension_numbers = #tpu.dot_dimension_numbers<[1], [0], [0], [1], [0, 0, 1, 1], [], []>} : vector<8x32xf32>, vector<32x128xf32>, vector<8x128xf32> -> vector<8x128xf32>
    %281 = arith.addf %279, %280 : vector<8x128xf32>
    %282 = vector.broadcast %5 : vector<1x128xf32> to vector<8x128xf32>
    %283 = arith.mulf %281, %282 : vector<8x128xf32>
    %284 = math.tanh %283 : vector<8x128xf32>
    %285 = vector.extract_strided_slice %284 {offsets = [0, 0], sizes = [8, 96], strides = [1, 1]} : vector<8x128xf32> to vector<8x96xf32>
    %cst_92 = arith.constant 5.000000e-01 : f32
    %286 = vector.broadcast %cst_92 : f32 to vector<8x96xf32>
    %287 = arith.mulf %285, %286 : vector<8x96xf32>
    %cst_93 = arith.constant 5.000000e-01 : f32
    %288 = vector.broadcast %cst_93 : f32 to vector<8x96xf32>
    %289 = arith.addf %287, %288 : vector<8x96xf32>
    %290 = vector.extract_strided_slice %289 {offsets = [0, 0], sizes = [8, 32], strides = [1, 1]} : vector<8x96xf32> to vector<8x32xf32>
    %291 = vector.extract_strided_slice %289 {offsets = [0, 32], sizes = [8, 32], strides = [1, 1]} : vector<8x96xf32> to vector<8x32xf32>
    %292 = vector.extract_strided_slice %289 {offsets = [0, 64], sizes = [8, 32], strides = [1, 1]} : vector<8x96xf32> to vector<8x32xf32>
    %293 = vector.extract_strided_slice %284 {offsets = [0, 96], sizes = [8, 32], strides = [1, 1]} : vector<8x128xf32> to vector<8x32xf32>
    %294 = arith.mulf %291, %271 : vector<8x32xf32>
    %295 = arith.mulf %290, %293 : vector<8x32xf32>
    %296 = arith.addf %294, %295 : vector<8x32xf32>
    %297 = math.tanh %296 : vector<8x32xf32>
    %298 = arith.mulf %292, %297 : vector<8x32xf32>
    %299 = arith.index_cast %277 : i32 to index
    %c0_94 = arith.constant 0 : index
    %300 = vector.load %arg11[%299, %c0_94] : memref<64x32xf32, #tpu.memory_space<vmem>>, vector<8x32xf32>
    tpu.vector_store %arg11[%299, %c0_94], %298 {strides = array<i32>} : memref<64x32xf32, #tpu.memory_space<vmem>>, vector<8x32xf32>,
    %c3_i32_95 = arith.constant 3 : i32
    %c8_i32_96 = arith.constant 8 : i32
    %301 = arith.muli %c3_i32_95, %c8_i32_96 : i32
    %302 = tpu.assume_multiple %301, 8 : i32
    %303 = arith.index_cast %302 : i32 to index
    %c0_97 = arith.constant 0 : index
    %304 = vector.load %arg10[%303, %c0_97] : memref<64x128xf32, #tpu.memory_space<vmem>>, vector<8x128xf32>
    %cst_98 = arith.constant dense<0.000000e+00> : vector<8x128xf32>
    %305 = tpu.matmul %298, %217, %cst_98 {dimension_numbers = #tpu.dot_dimension_numbers<[1], [0], [0], [1], [0, 0, 1, 1], [], []>} : vector<8x32xf32>, vector<32x128xf32>, vector<8x128xf32> -> vector<8x128xf32>
    %306 = arith.addf %304, %305 : vector<8x128xf32>
    %307 = vector.broadcast %5 : vector<1x128xf32> to vector<8x128xf32>
    %308 = arith.mulf %306, %307 : vector<8x128xf32>
    %309 = math.tanh %308 : vector<8x128xf32>
    %310 = vector.extract_strided_slice %309 {offsets = [0, 0], sizes = [8, 96], strides = [1, 1]} : vector<8x128xf32> to vector<8x96xf32>
    %cst_99 = arith.constant 5.000000e-01 : f32
    %311 = vector.broadcast %cst_99 : f32 to vector<8x96xf32>
    %312 = arith.mulf %310, %311 : vector<8x96xf32>
    %cst_100 = arith.constant 5.000000e-01 : f32
    %313 = vector.broadcast %cst_100 : f32 to vector<8x96xf32>
    %314 = arith.addf %312, %313 : vector<8x96xf32>
    %315 = vector.extract_strided_slice %314 {offsets = [0, 0], sizes = [8, 32], strides = [1, 1]} : vector<8x96xf32> to vector<8x32xf32>
    %316 = vector.extract_strided_slice %314 {offsets = [0, 32], sizes = [8, 32], strides = [1, 1]} : vector<8x96xf32> to vector<8x32xf32>
    %317 = vector.extract_strided_slice %314 {offsets = [0, 64], sizes = [8, 32], strides = [1, 1]} : vector<8x96xf32> to vector<8x32xf32>
    %318 = vector.extract_strided_slice %309 {offsets = [0, 96], sizes = [8, 32], strides = [1, 1]} : vector<8x128xf32> to vector<8x32xf32>
    %319 = arith.mulf %316, %296 : vector<8x32xf32>
    %320 = arith.mulf %315, %318 : vector<8x32xf32>
    %321 = arith.addf %319, %320 : vector<8x32xf32>
    %322 = math.tanh %321 : vector<8x32xf32>
    %323 = arith.mulf %317, %322 : vector<8x32xf32>
    %324 = arith.index_cast %302 : i32 to index
    %c0_101 = arith.constant 0 : index
    %325 = vector.load %arg11[%324, %c0_101] : memref<64x32xf32, #tpu.memory_space<vmem>>, vector<8x32xf32>
    tpu.vector_store %arg11[%324, %c0_101], %323 {strides = array<i32>} : memref<64x32xf32, #tpu.memory_space<vmem>>, vector<8x32xf32>,
    %c4_i32_102 = arith.constant 4 : i32
    %c8_i32_103 = arith.constant 8 : i32
    %326 = arith.muli %c4_i32_102, %c8_i32_103 : i32
    %327 = tpu.assume_multiple %326, 8 : i32
    %328 = arith.index_cast %327 : i32 to index
    %c0_104 = arith.constant 0 : index
    %329 = vector.load %arg10[%328, %c0_104] : memref<64x128xf32, #tpu.memory_space<vmem>>, vector<8x128xf32>
    %cst_105 = arith.constant dense<0.000000e+00> : vector<8x128xf32>
    %330 = tpu.matmul %323, %217, %cst_105 {dimension_numbers = #tpu.dot_dimension_numbers<[1], [0], [0], [1], [0, 0, 1, 1], [], []>} : vector<8x32xf32>, vector<32x128xf32>, vector<8x128xf32> -> vector<8x128xf32>
    %331 = arith.addf %329, %330 : vector<8x128xf32>
    %332 = vector.broadcast %5 : vector<1x128xf32> to vector<8x128xf32>
    %333 = arith.mulf %331, %332 : vector<8x128xf32>
    %334 = math.tanh %333 : vector<8x128xf32>
    %335 = vector.extract_strided_slice %334 {offsets = [0, 0], sizes = [8, 96], strides = [1, 1]} : vector<8x128xf32> to vector<8x96xf32>
    %cst_106 = arith.constant 5.000000e-01 : f32
    %336 = vector.broadcast %cst_106 : f32 to vector<8x96xf32>
    %337 = arith.mulf %335, %336 : vector<8x96xf32>
    %cst_107 = arith.constant 5.000000e-01 : f32
    %338 = vector.broadcast %cst_107 : f32 to vector<8x96xf32>
    %339 = arith.addf %337, %338 : vector<8x96xf32>
    %340 = vector.extract_strided_slice %339 {offsets = [0, 0], sizes = [8, 32], strides = [1, 1]} : vector<8x96xf32> to vector<8x32xf32>
    %341 = vector.extract_strided_slice %339 {offsets = [0, 32], sizes = [8, 32], strides = [1, 1]} : vector<8x96xf32> to vector<8x32xf32>
    %342 = vector.extract_strided_slice %339 {offsets = [0, 64], sizes = [8, 32], strides = [1, 1]} : vector<8x96xf32> to vector<8x32xf32>
    %343 = vector.extract_strided_slice %334 {offsets = [0, 96], sizes = [8, 32], strides = [1, 1]} : vector<8x128xf32> to vector<8x32xf32>
    %344 = arith.mulf %341, %321 : vector<8x32xf32>
    %345 = arith.mulf %340, %343 : vector<8x32xf32>
    %346 = arith.addf %344, %345 : vector<8x32xf32>
    %347 = math.tanh %346 : vector<8x32xf32>
    %348 = arith.mulf %342, %347 : vector<8x32xf32>
    %349 = arith.index_cast %327 : i32 to index
    %c0_108 = arith.constant 0 : index
    %350 = vector.load %arg11[%349, %c0_108] : memref<64x32xf32, #tpu.memory_space<vmem>>, vector<8x32xf32>
    tpu.vector_store %arg11[%349, %c0_108], %348 {strides = array<i32>} : memref<64x32xf32, #tpu.memory_space<vmem>>, vector<8x32xf32>,
    %c5_i32_109 = arith.constant 5 : i32
    %c8_i32_110 = arith.constant 8 : i32
    %351 = arith.muli %c5_i32_109, %c8_i32_110 : i32
    %352 = tpu.assume_multiple %351, 8 : i32
    %353 = arith.index_cast %352 : i32 to index
    %c0_111 = arith.constant 0 : index
    %354 = vector.load %arg10[%353, %c0_111] : memref<64x128xf32, #tpu.memory_space<vmem>>, vector<8x128xf32>
    %cst_112 = arith.constant dense<0.000000e+00> : vector<8x128xf32>
    %355 = tpu.matmul %348, %217, %cst_112 {dimension_numbers = #tpu.dot_dimension_numbers<[1], [0], [0], [1], [0, 0, 1, 1], [], []>} : vector<8x32xf32>, vector<32x128xf32>, vector<8x128xf32> -> vector<8x128xf32>
    %356 = arith.addf %354, %355 : vector<8x128xf32>
    %357 = vector.broadcast %5 : vector<1x128xf32> to vector<8x128xf32>
    %358 = arith.mulf %356, %357 : vector<8x128xf32>
    %359 = math.tanh %358 : vector<8x128xf32>
    %360 = vector.extract_strided_slice %359 {offsets = [0, 0], sizes = [8, 96], strides = [1, 1]} : vector<8x128xf32> to vector<8x96xf32>
    %cst_113 = arith.constant 5.000000e-01 : f32
    %361 = vector.broadcast %cst_113 : f32 to vector<8x96xf32>
    %362 = arith.mulf %360, %361 : vector<8x96xf32>
    %cst_114 = arith.constant 5.000000e-01 : f32
    %363 = vector.broadcast %cst_114 : f32 to vector<8x96xf32>
    %364 = arith.addf %362, %363 : vector<8x96xf32>
    %365 = vector.extract_strided_slice %364 {offsets = [0, 0], sizes = [8, 32], strides = [1, 1]} : vector<8x96xf32> to vector<8x32xf32>
    %366 = vector.extract_strided_slice %364 {offsets = [0, 32], sizes = [8, 32], strides = [1, 1]} : vector<8x96xf32> to vector<8x32xf32>
    %367 = vector.extract_strided_slice %364 {offsets = [0, 64], sizes = [8, 32], strides = [1, 1]} : vector<8x96xf32> to vector<8x32xf32>
    %368 = vector.extract_strided_slice %359 {offsets = [0, 96], sizes = [8, 32], strides = [1, 1]} : vector<8x128xf32> to vector<8x32xf32>
    %369 = arith.mulf %366, %346 : vector<8x32xf32>
    %370 = arith.mulf %365, %368 : vector<8x32xf32>
    %371 = arith.addf %369, %370 : vector<8x32xf32>
    %372 = math.tanh %371 : vector<8x32xf32>
    %373 = arith.mulf %367, %372 : vector<8x32xf32>
    %374 = arith.index_cast %352 : i32 to index
    %c0_115 = arith.constant 0 : index
    %375 = vector.load %arg11[%374, %c0_115] : memref<64x32xf32, #tpu.memory_space<vmem>>, vector<8x32xf32>
    tpu.vector_store %arg11[%374, %c0_115], %373 {strides = array<i32>} : memref<64x32xf32, #tpu.memory_space<vmem>>, vector<8x32xf32>,
    %c6_i32_116 = arith.constant 6 : i32
    %c8_i32_117 = arith.constant 8 : i32
    %376 = arith.muli %c6_i32_116, %c8_i32_117 : i32
    %377 = tpu.assume_multiple %376, 8 : i32
    %378 = arith.index_cast %377 : i32 to index
    %c0_118 = arith.constant 0 : index
    %379 = vector.load %arg10[%378, %c0_118] : memref<64x128xf32, #tpu.memory_space<vmem>>, vector<8x128xf32>
    %cst_119 = arith.constant dense<0.000000e+00> : vector<8x128xf32>
    %380 = tpu.matmul %373, %217, %cst_119 {dimension_numbers = #tpu.dot_dimension_numbers<[1], [0], [0], [1], [0, 0, 1, 1], [], []>} : vector<8x32xf32>, vector<32x128xf32>, vector<8x128xf32> -> vector<8x128xf32>
    %381 = arith.addf %379, %380 : vector<8x128xf32>
    %382 = vector.broadcast %5 : vector<1x128xf32> to vector<8x128xf32>
    %383 = arith.mulf %381, %382 : vector<8x128xf32>
    %384 = math.tanh %383 : vector<8x128xf32>
    %385 = vector.extract_strided_slice %384 {offsets = [0, 0], sizes = [8, 96], strides = [1, 1]} : vector<8x128xf32> to vector<8x96xf32>
    %cst_120 = arith.constant 5.000000e-01 : f32
    %386 = vector.broadcast %cst_120 : f32 to vector<8x96xf32>
    %387 = arith.mulf %385, %386 : vector<8x96xf32>
    %cst_121 = arith.constant 5.000000e-01 : f32
    %388 = vector.broadcast %cst_121 : f32 to vector<8x96xf32>
    %389 = arith.addf %387, %388 : vector<8x96xf32>
    %390 = vector.extract_strided_slice %389 {offsets = [0, 0], sizes = [8, 32], strides = [1, 1]} : vector<8x96xf32> to vector<8x32xf32>
    %391 = vector.extract_strided_slice %389 {offsets = [0, 32], sizes = [8, 32], strides = [1, 1]} : vector<8x96xf32> to vector<8x32xf32>
    %392 = vector.extract_strided_slice %389 {offsets = [0, 64], sizes = [8, 32], strides = [1, 1]} : vector<8x96xf32> to vector<8x32xf32>
    %393 = vector.extract_strided_slice %384 {offsets = [0, 96], sizes = [8, 32], strides = [1, 1]} : vector<8x128xf32> to vector<8x32xf32>
    %394 = arith.mulf %391, %371 : vector<8x32xf32>
    %395 = arith.mulf %390, %393 : vector<8x32xf32>
    %396 = arith.addf %394, %395 : vector<8x32xf32>
    %397 = math.tanh %396 : vector<8x32xf32>
    %398 = arith.mulf %392, %397 : vector<8x32xf32>
    %399 = arith.index_cast %377 : i32 to index
    %c0_122 = arith.constant 0 : index
    %400 = vector.load %arg11[%399, %c0_122] : memref<64x32xf32, #tpu.memory_space<vmem>>, vector<8x32xf32>
    tpu.vector_store %arg11[%399, %c0_122], %398 {strides = array<i32>} : memref<64x32xf32, #tpu.memory_space<vmem>>, vector<8x32xf32>,
    %c7_i32_123 = arith.constant 7 : i32
    %c8_i32_124 = arith.constant 8 : i32
    %401 = arith.muli %c7_i32_123, %c8_i32_124 : i32
    %402 = tpu.assume_multiple %401, 8 : i32
    %403 = arith.index_cast %402 : i32 to index
    %c0_125 = arith.constant 0 : index
    %404 = vector.load %arg10[%403, %c0_125] : memref<64x128xf32, #tpu.memory_space<vmem>>, vector<8x128xf32>
    %cst_126 = arith.constant dense<0.000000e+00> : vector<8x128xf32>
    %405 = tpu.matmul %398, %217, %cst_126 {dimension_numbers = #tpu.dot_dimension_numbers<[1], [0], [0], [1], [0, 0, 1, 1], [], []>} : vector<8x32xf32>, vector<32x128xf32>, vector<8x128xf32> -> vector<8x128xf32>
    %406 = arith.addf %404, %405 : vector<8x128xf32>
    %407 = vector.broadcast %5 : vector<1x128xf32> to vector<8x128xf32>
    %408 = arith.mulf %406, %407 : vector<8x128xf32>
    %409 = math.tanh %408 : vector<8x128xf32>
    %410 = vector.extract_strided_slice %409 {offsets = [0, 0], sizes = [8, 96], strides = [1, 1]} : vector<8x128xf32> to vector<8x96xf32>
    %cst_127 = arith.constant 5.000000e-01 : f32
    %411 = vector.broadcast %cst_127 : f32 to vector<8x96xf32>
    %412 = arith.mulf %410, %411 : vector<8x96xf32>
    %cst_128 = arith.constant 5.000000e-01 : f32
    %413 = vector.broadcast %cst_128 : f32 to vector<8x96xf32>
    %414 = arith.addf %412, %413 : vector<8x96xf32>
    %415 = vector.extract_strided_slice %414 {offsets = [0, 0], sizes = [8, 32], strides = [1, 1]} : vector<8x96xf32> to vector<8x32xf32>
    %416 = vector.extract_strided_slice %414 {offsets = [0, 32], sizes = [8, 32], strides = [1, 1]} : vector<8x96xf32> to vector<8x32xf32>
    %417 = vector.extract_strided_slice %414 {offsets = [0, 64], sizes = [8, 32], strides = [1, 1]} : vector<8x96xf32> to vector<8x32xf32>
    %418 = vector.extract_strided_slice %409 {offsets = [0, 96], sizes = [8, 32], strides = [1, 1]} : vector<8x128xf32> to vector<8x32xf32>
    %419 = arith.mulf %416, %396 : vector<8x32xf32>
    %420 = arith.mulf %415, %418 : vector<8x32xf32>
    %421 = arith.addf %419, %420 : vector<8x32xf32>
    %422 = math.tanh %421 : vector<8x32xf32>
    %423 = arith.mulf %417, %422 : vector<8x32xf32>
    %424 = arith.index_cast %402 : i32 to index
    %c0_129 = arith.constant 0 : index
    %425 = vector.load %arg11[%424, %c0_129] : memref<64x32xf32, #tpu.memory_space<vmem>>, vector<8x32xf32>
    tpu.vector_store %arg11[%424, %c0_129], %423 {strides = array<i32>} : memref<64x32xf32, #tpu.memory_space<vmem>>, vector<8x32xf32>,
    %c8_i32_130 = arith.constant 8 : i32
    %cst_131 = arith.constant 0.000000e+00 : f32
    %426 = vector.broadcast %cst_131 : f32 to vector<8x128xf32>
    %c0_132 = arith.constant 0 : index
    %c0_133 = arith.constant 0 : index
    %427 = vector.load %arg8[%c0_132, %c0_133] : memref<1x128xf32, #tpu.memory_space<vmem>>, vector<1x128xf32>
    %428 = vector.broadcast %427 : vector<1x128xf32> to vector<8x128xf32>
    %429 = arith.addf %426, %428 : vector<8x128xf32>
    %c0_134 = arith.constant 0 : index
    %c0_135 = arith.constant 0 : index
    %430 = tpu.strided_load %arg11[%c0_134, %c0_135] {strides = array<i32: 8, 1>} : memref<64x32xf32, #tpu.memory_space<vmem>>, vector<8x32xf32>
    %c0_136 = arith.constant 0 : index
    %c0_137 = arith.constant 0 : index
    %431 = vector.load %arg7[%c0_136, %c0_137] : memref<128x128xf32, #tpu.memory_space<vmem>>, vector<32x128xf32>
    %cst_138 = arith.constant dense<0.000000e+00> : vector<8x128xf32>
    %432 = tpu.matmul %430, %431, %cst_138 {dimension_numbers = #tpu.dot_dimension_numbers<[1], [0], [0], [1], [0, 0, 1, 1], [], []>} : vector<8x32xf32>, vector<32x128xf32>, vector<8x128xf32> -> vector<8x128xf32>
    %433 = arith.addf %429, %432 : vector<8x128xf32>
    %c1 = arith.constant 1 : index
    %c0_139 = arith.constant 0 : index
    %434 = tpu.strided_load %arg11[%c1, %c0_139] {strides = array<i32: 8, 1>} : memref<64x32xf32, #tpu.memory_space<vmem>>, vector<8x32xf32>
    %c32 = arith.constant 32 : index
    %c0_140 = arith.constant 0 : index
    %435 = vector.load %arg7[%c32, %c0_140] : memref<128x128xf32, #tpu.memory_space<vmem>>, vector<32x128xf32>
    %cst_141 = arith.constant dense<0.000000e+00> : vector<8x128xf32>
    %436 = tpu.matmul %434, %435, %cst_141 {dimension_numbers = #tpu.dot_dimension_numbers<[1], [0], [0], [1], [0, 0, 1, 1], [], []>} : vector<8x32xf32>, vector<32x128xf32>, vector<8x128xf32> -> vector<8x128xf32>
    %437 = arith.addf %433, %436 : vector<8x128xf32>
    %c2 = arith.constant 2 : index
    %c0_142 = arith.constant 0 : index
    %438 = tpu.strided_load %arg11[%c2, %c0_142] {strides = array<i32: 8, 1>} : memref<64x32xf32, #tpu.memory_space<vmem>>, vector<8x32xf32>
    %c64 = arith.constant 64 : index
    %c0_143 = arith.constant 0 : index
    %439 = vector.load %arg7[%c64, %c0_143] : memref<128x128xf32, #tpu.memory_space<vmem>>, vector<32x128xf32>
    %cst_144 = arith.constant dense<0.000000e+00> : vector<8x128xf32>
    %440 = tpu.matmul %438, %439, %cst_144 {dimension_numbers = #tpu.dot_dimension_numbers<[1], [0], [0], [1], [0, 0, 1, 1], [], []>} : vector<8x32xf32>, vector<32x128xf32>, vector<8x128xf32> -> vector<8x128xf32>
    %441 = arith.addf %437, %440 : vector<8x128xf32>
    %c3 = arith.constant 3 : index
    %c0_145 = arith.constant 0 : index
    %442 = tpu.strided_load %arg11[%c3, %c0_145] {strides = array<i32: 8, 1>} : memref<64x32xf32, #tpu.memory_space<vmem>>, vector<8x32xf32>
    %c96 = arith.constant 96 : index
    %c0_146 = arith.constant 0 : index
    %443 = vector.load %arg7[%c96, %c0_146] : memref<128x128xf32, #tpu.memory_space<vmem>>, vector<32x128xf32>
    %cst_147 = arith.constant dense<0.000000e+00> : vector<8x128xf32>
    %444 = tpu.matmul %442, %443, %cst_147 {dimension_numbers = #tpu.dot_dimension_numbers<[1], [0], [0], [1], [0, 0, 1, 1], [], []>} : vector<8x32xf32>, vector<32x128xf32>, vector<8x128xf32> -> vector<8x128xf32>
    %445 = arith.addf %441, %444 : vector<8x128xf32>
    %c0_148 = arith.constant 0 : index
    %c0_149 = arith.constant 0 : index
    %446 = vector.load %arg9[%c0_148, %c0_149] : memref<8x128xf32, #tpu.memory_space<vmem>>, vector<8x128xf32>
    tpu.vector_store %arg9[%c0_148, %c0_149], %445 {strides = array<i32>} : memref<8x128xf32, #tpu.memory_space<vmem>>, vector<8x128xf32>,
    return
  }
}

</mosaic_0001>

<bundles_post_ra>
// kernel: eeg_lstm_building_block.1
= control target key start
LH: loop header
LB: loop body
LE: loop exit
PB: predicated region body
PF: predicated region fallthrough
CT: control target
= control target key end

     0   :  { %vm57_vm0 = vcmask 130048   ;;  %v2933_v3 = vmov 0.0|0.0   ;;  %vm2934_vm1 = vmmov 0   ;;  %v2935_v4 = vmov 0.0   ;;  %s2938_s15 = smov 64   ;;  %s3422_s1 = inlined_call_operand.vmem [shape: f32[16,128], index: 1, kind: input, shape index: {}]   ;;  %s3423_s0 = inlined_call_operand.vmem [shape: f32[64,16], index: 0, kind: input, shape index: {}]   ;;  %s3424_s2 = inlined_call_operand.vmem [shape: f32[32,128], index: 2, kind: input, shape index: {}]   ;;  %s3425_s3 = inlined_call_operand.vmem [shape: f32[1,128], index: 3, kind: input, shape index: {}]   ;;  %s3426_s4 = inlined_call_operand.vmem [shape: f32[32,128], index: 4, kind: input, shape index: {}]   ;;  %s3427_s5 = inlined_call_operand.vmem [shape: f32[32,128], index: 5, kind: input, shape index: {}]   ;;  %s3428_s6 = inlined_call_operand.vmem [shape: f32[1,128], index: 6, kind: input, shape index: {}]   ;;  %s3429_s7 = inlined_call_operand.vmem [shape: f32[128,128], index: 7, kind: input, shape index: {}]   ;;  %s3430_s8 = inlined_call_operand.vmem [shape: f32[1,128], index: 8, kind: input, shape index: {}]   ;;  %s3431_s9 = inlined_call_operand.vmem [shape: f32[8,128], index: 9, kind: output, shape index: {}]  }
   0x1   :  { %v36_v0 = vld [vmem:[%s3422_s1] sm:$0xff]  ;;  %v37_v1 = vld [vmem:[%s3422_s1 + $0x8] sm:$0xff]  ;;  %2740 = vmatprep.subr.bf16.mxu0 %v2933_v3  ;;  %2514 = vmatprep.mubr.msk.f32.mxu0 %vm2934_vm1, %v2935_v4  ;;  %v40_v10 = vld [vmem:[%s3424_s2 + $0x10] sm:$0xff]  ;;  %v32_v26 = vlaneseq  ;;  %v2936_v38 = vmov 1.0   ;;  %vm196_vm3 = vcmask 261120  }
   0x2   :  { %v43_v2 = vld [vmem:[%s3423_s0] sm:$0xff]  ;;  %v2724_v5 = vpack.c.bf16 %v37_v1, %v36_v0  ;;  %v39_v7 = vld [vmem:[%s3424_s2 + $0x8] sm:$0xff]  ;;  %v41_v11 = vld [vmem:[%s3424_s2 + $0x18] sm:$0xff] }
   0x3   :  { %2472 = vmatprep.mubr.msk.f32.mxu1 %vm57_vm0, %v43_v2  ;;  %v38_v6 = vld [vmem:[%s3424_s2] sm:$0xff]  ;;  %v44_v9 = vld [vmem:[%s3423_s0 + $0x8] sm:$0xff]  ;;  %v45_v12 = vld [vmem:[%s3423_s0 + $0x10] sm:$0xff]  ;;  %v3026_v13 = vpack.c.bf16 %v41_v11, %v40_v10  ;;  %v33_v31 = vand.u32 127, %v32_v26 }
   0x4   :  { %v3008_v8 = vpack.c.bf16 %v39_v7, %v38_v6  ;;  %2725 = vmatprep.subr.bf16.mxu1 %v2724_v5  ;;  %v46_v14 = vld [vmem:[%s3423_s0 + $0x18] sm:$0xff]  ;;  %v47_v15 = vld [vmem:[%s3423_s0 + $0x20] sm:$0xff]  ;;  %v48_v16 = vld [vmem:[%s3423_s0 + $0x28] sm:$0xff] }
   0x5   :  { %2727 = vmatpush3.bf16.msra.mxu1 %v2724_v5  ;;  %v49_v17 = vld [vmem:[%s3423_s0 + $0x30] sm:$0xff]  ;;  %v50_v18 = vld [vmem:[%s3423_s0 + $0x38] sm:$0xff]  ;;  %v2309_v19 = vld [vmem:[%s3425_s3] ss:$0 sm:$0xff]  ;;  %vm34_vm2 = vcmp.lt.s32.totalorder %v33_v31, 96  ;;  %s2937_s3 = smov 32  }
   0x6   :  { %2742 = vmatpush3.bf16.msra.mxu0 %v3008_v8  ;;  %2728 = vmatprep.subr.bf16.mxu1 %v2933_v3  ;;  %v3079_v39 = vsel %vm34_vm2, 0.5, %v2936_v38 }
   0x7   :  { %2743 = vmatprep.subr.bf16.mxu0 %v2933_v3 }
   0x8   :  { %2473 = vmatmul.mubr.msk.f32.vlgmr.msra.gmra.mrb[0].mxu1 %vm57_vm0, %v44_v9 }
   0x9   :  { %2730 = vmatpush3.bf16.msra.mxu1 %v3008_v8  ;;  %2475 = vmatprep.mubr.msk.f32.mxu1 %vm57_vm0, %v45_v12 }
   0xa   :  { %2731 = vmatprep.subr.bf16.mxu1 %v2933_v3  ;;  %2745 = vmatpush3.bf16.msra.mxu0 %v3026_v13 }
   0xb   :  { %2752 = vmatprep.subr.bf16.mxu0 %v2933_v3 }
   0xc   :  { %2476 = vmatmul.mubr.msk.f32.gmra.mrb[2].mxu1 %vm57_vm0, %v46_v14 }
   0xd   :  { %2478 = vmatprep.mubr.msk.f32.mxu1 %vm57_vm0, %v47_v15  ;;  %2733 = vmatpush3.bf16.msra.mxu1 %v3026_v13 }
   0xe   :  { %2734 = vmatprep.subr.bf16.mxu1 %v2933_v3 }
  0x10   :  { %2479 = vmatmul.mubr.msk.f32.gmra.mrb[4].mxu1 %vm57_vm0, %v48_v16 }
  0x11   :  { %2481 = vmatprep.mubr.msk.f32.mxu1 %vm57_vm0, %v49_v17 }
  0x14   :  { %2482 = vmatmul.mubr.msk.f32.gmra.mrb[6].mxu1 %vm57_vm0, %v50_v18 }
  0x15   :  { %2492 = vmatprep.mubr.msk.f32.mxu1 %vm2934_vm1, %v2935_v4 }
  0x18   :  { %2493 = vmatmul.mubr.f32.vlgmr.msra.gmra.mrb[8].mxu1 %v2935_v4 }
  0x19   :  { %2736 = vmatpush3.bf16.msra.mxu1 %v3008_v8  ;;  %2503 = vmatprep.mubr.msk.f32.mxu1 %vm2934_vm1, %v2935_v4 }
  0x1a   :  { %2737 = vmatprep.subr.bf16.mxu1 %v2933_v3 }
  0x1d   :  { %2739 = vmatpush3.bf16.msra.mxu1 %v3026_v13 }
  0x1e   :  { %2746 = vmatprep.subr.bf16.mxu1 %v2933_v3 }
  0xdb   :  { %v2474_v20 = vpop.f32.mrb[0].mxu1 }
  0xdc   :  { %v154_v21 = vadd.f32 %v2474_v20, %v2309_v19  ;;  %v148_v22 = vpop.f32.mrb[1].mxu1 }
  0xdd   :  { %v149_v37 = vadd.f32 %v2309_v19, %v148_v22 }
  0xdf   :  { %v2477_v23 = vpop.f32.mrb[2].mxu1 }
  0xe0   :  { %v3067_v24 = vadd.f32 %v2477_v23, %v2309_v19  ;;  %v158_v25 = vpop.f32.mrb[3].mxu1 }
  0xe1   :  { %v3069_v27 = vadd.f32 %v2309_v19, %v158_v25 }
  0xe3   :  { %v2480_v28 = vpop.f32.mrb[4].mxu1 }
  0xe4   :  { %v3071_v29 = vadd.f32 %v2480_v28, %v2309_v19  ;;  %v168_v30 = vpop.f32.mrb[5].mxu1 }
  0xe5   :  { %v3073_v32 = vadd.f32 %v2309_v19, %v168_v30 }
  0xe7   :  { %v2483_v33 = vpop.f32.mrb[6].mxu1 }
  0xe8   :  { %v3075_v34 = vadd.f32 %v2483_v33, %v2309_v19  ;;  %v178_v35 = vpop.f32.mrb[7].mxu1 }
  0xe9   :  { %v3077_v36 = vadd.f32 %v2309_v19, %v178_v35 }
  0xeb   :  { %v266_v40 = vpop.f32.mrb[8].mxu1 }
  0xec   :  { %v270_v41 = vadd.f32 %v266_v40, %v149_v37  ;;  %v2494_v42 = vpop.f32.mrb[9].mxu1 }
  0xee   :  { %v271_v43 = vmul.f32 %v270_v41, %v3079_v39 }
  0xf0   :  { %2869 = vtanh.f32 %v271_v43 }
  0xfa   :  { %v2870_v44 = vpop.eup %2869 }
  0xfb   :  { %277 = vrot.lane.b32.xlu0 %v2870_v44, %s2937_s3  ;;  %v273_v45 = vmul.f32 0.5, %v2870_v44 }
  0xfd   :  { %v274_v46 = vadd.f32 0.5, %v273_v45 }
  0xff   :  { %v275_v49 = vmul.f32 0.0, %v274_v46 }
 0x16d   :  { %v278_v47 = vpop.permute.xlu0 %277 }
 0x16e   :  { %v280_v48 = vmul.f32 %v278_v47, %v274_v46 }
 0x170   :  { %282 = vrot.lane.b32.xlu0 %v280_v48, %s2937_s3 }
 0x1e2   :  { %v283_v50 = vpop.permute.xlu0 %282 }
 0x1e3   :  { %v285_v51 = vadd.f32 %v283_v50, %v275_v49 }
 0x1e5   :  { %2871 = vtanh.f32 %v285_v51 }
 0x1ef   :  { %v2872_v52 = vpop.eup %2871 }
 0x1f0   :  { %288 = vrot.lane.b32.xlu1 %v2872_v52, %s2937_s3 }
 0x262   :  { %v289_v53 = vpop.permute.xlu1 %288 }
 0x263   :  { %v291_v54 = vmul.f32 %v289_v53, %v274_v46 }
 0x265   :  { %293 = vrot.lane.b32.xlu1 %v291_v54, %s2938_s15 }
 0x2d7   :  { %v294_v55 = vpop.permute.xlu1 %293 }
 0x2d8   :  { %296 = vst.msk [vmem:[#allocation3] sm:$0xff] %vm196_vm3, %v294_v55  ;;  %2504 = vmatmul.mubr.msk.f32.vlgmr.msra.gmra.mrb[10].mxu1 %vm196_vm3, %v294_v55 }
 0x2d9   :  { %2748 = vmatpush3.bf16.msra.mxu1 %v3008_v8  ;;  %2525 = vmatprep.mubr.msk.f32.mxu1 %vm2934_vm1, %v2935_v4 }
 0x2da   :  { %2749 = vmatprep.subr.bf16.mxu1 %v2933_v3 }
 0x2dd   :  { %2751 = vmatpush3.bf16.msra.mxu1 %v3026_v13 }
 0x2de   :  { %2758 = vmatprep.subr.bf16.mxu1 %v2933_v3 }
 0x3ab   :  { %v367_v56 = vpop.f32.mrb[10].mxu1 }
 0x3ac   :  { %v371_v57 = vadd.f32 %v367_v56, %v154_v21  ;;  %v2505_v58 = vpop.f32.mrb[11].mxu1 }
 0x3ae   :  { %v372_v59 = vmul.f32 %v371_v57, %v3079_v39 }
 0x3b0   :  { %2873 = vtanh.f32 %v372_v59 }
 0x3ba   :  { %v2874_v60 = vpop.eup %2873 }
 0x3bb   :  { %378 = vrot.lane.b32.xlu0 %v2874_v60, %s2937_s3  ;;  %v374_v61 = vmul.f32 0.5, %v2874_v60 }
 0x3bd   :  { %v375_v62 = vadd.f32 0.5, %v374_v61 }
 0x3bf   :  { %v376_v1 = vmul.f32 %v375_v62, %v285_v51 }
 0x42d   :  { %v379_v63 = vpop.permute.xlu0 %378 }
 0x42e   :  { %v381_v0 = vmul.f32 %v379_v63, %v375_v62 }
 0x430   :  { %383 = vrot.lane.b32.xlu1 %v381_v0, %s2937_s3 }
 0x4a2   :  { %v384_v2 = vpop.permute.xlu1 %383 }
 0x4a3   :  { %v386_v5 = vadd.f32 %v384_v2, %v376_v1 }
 0x4a5   :  { %2875 = vtanh.f32 %v386_v5 }
 0x4af   :  { %v2876_v6 = vpop.eup %2875 }
 0x4b0   :  { %389 = vrot.lane.b32.xlu0 %v2876_v6, %s2937_s3 }
 0x522   :  { %v390_v7 = vpop.permute.xlu0 %389 }
 0x523   :  { %v392_v9 = vmul.f32 %v390_v7, %v375_v62 }
 0x525   :  { %394 = vrot.lane.b32.xlu1 %v392_v9, %s2938_s15 }
 0x597   :  { %v395_v10 = vpop.permute.xlu1 %394 }
 0x598   :  { %398 = vst.msk [vmem:[#allocation3 + $0x8] sm:$0xff] %vm196_vm3, %v395_v10  ;;  %2515 = vmatmul.mubr.msk.f32.vlgmr.msra.gmra.mrb[0].mxu0 %vm196_vm3, %v395_v10 }
 0x599   :  { %2754 = vmatpush3.bf16.msra.mxu0 %v3008_v8  ;;  %2536 = vmatprep.mubr.msk.f32.mxu0 %vm2934_vm1, %v2935_v4 }
 0x59a   :  { %2755 = vmatprep.subr.bf16.mxu0 %v2933_v3 }
 0x59d   :  { %2757 = vmatpush3.bf16.msra.mxu0 %v3026_v13 }
 0x59e   :  { %2764 = vmatprep.subr.bf16.mxu0 %v2933_v3 }
 0x66b   :  { %v469_v11 = vpop.f32.mrb[0].mxu0 }
 0x66c   :  { %v473_v12 = vadd.f32 %v469_v11, %v3069_v27  ;;  %v2516_v14 = vpop.f32.mrb[1].mxu0 }
 0x66d   :  { %v1012_v14 = vld [vmem:[%s3426_s4 + $0x8] sm:$0xff] }
 0x66e   :  { %v474_v15 = vmul.f32 %v473_v12, %v3079_v39 }
 0x670   :  { %2877 = vtanh.f32 %v474_v15 }
 0x67a   :  { %v2878_v16 = vpop.eup %2877 }
 0x67b   :  { %480 = vrot.lane.b32.xlu0 %v2878_v16, %s2937_s3  ;;  %v476_v17 = vmul.f32 0.5, %v2878_v16 }
 0x67d   :  { %v477_v18 = vadd.f32 0.5, %v476_v17 }
 0x67f   :  { %v478_v21 = vmul.f32 %v477_v18, %v386_v5 }
 0x6ed   :  { %v481_v19 = vpop.permute.xlu0 %480 }
 0x6ee   :  { %v483_v20 = vmul.f32 %v481_v19, %v477_v18  ;;  %v1013_v19 = vld [vmem:[%s3426_s4 + $0x10] sm:$0xff] }
 0x6f0   :  { %485 = vrot.lane.b32.xlu1 %v483_v20, %s2937_s3  ;;  %v1014_v20 = vld [vmem:[%s3426_s4 + $0x18] sm:$0xff] }
 0x762   :  { %v486_v22 = vpop.permute.xlu1 %485 }
 0x763   :  { %v488_v23 = vadd.f32 %v486_v22, %v478_v21  ;;  %v2780_v21 = vpack.c.bf16 %v1014_v20, %v1013_v19 }
 0x765   :  { %2879 = vtanh.f32 %v488_v23 }
 0x76f   :  { %v2880_v25 = vpop.eup %2879 }
 0x770   :  { %491 = vrot.lane.b32.xlu0 %v2880_v25, %s2937_s3  ;;  %v1021_v25 = vld [vmem:[#allocation3 + $0x8] sm:$0xff] }
 0x7e2   :  { %v492_v26 = vpop.permute.xlu0 %491 }
 0x7e3   :  { %v494_v27 = vmul.f32 %v492_v26, %v477_v18 }
 0x7e5   :  { %496 = vrot.lane.b32.xlu1 %v494_v27, %s2938_s15 }
 0x857   :  { %v497_v28 = vpop.permute.xlu1 %496 }
 0x858   :  { %500 = vst.msk [vmem:[#allocation3 + $0x10] sm:$0xff] %vm196_vm3, %v497_v28  ;;  %2526 = vmatmul.mubr.msk.f32.vlgmr.msra.gmra.mrb[12].mxu1 %vm196_vm3, %v497_v28 }
 0x859   :  { %2760 = vmatpush3.bf16.msra.mxu1 %v3008_v8  ;;  %2547 = vmatprep.mubr.msk.f32.mxu1 %vm2934_vm1, %v2935_v4 }
 0x85a   :  { %2761 = vmatprep.subr.bf16.mxu1 %v2933_v3 }
 0x85d   :  { %2763 = vmatpush3.bf16.msra.mxu1 %v3026_v13 }
 0x85e   :  { %2770 = vmatprep.subr.bf16.mxu1 %v2933_v3 }
 0x85f   :  { %v1022_v26 = vld [vmem:[#allocation3 + $0x10] sm:$0xff] }
 0x92b   :  { %v571_v30 = vpop.f32.mrb[12].mxu1 }
 0x92c   :  { %v575_v31 = vadd.f32 %v571_v30, %v3067_v24  ;;  %v2527_v33 = vpop.f32.mrb[13].mxu1 }
 0x92e   :  { %v576_v35 = vmul.f32 %v575_v31, %v3079_v39 }
 0x930   :  { %2881 = vtanh.f32 %v576_v35 }
 0x93a   :  { %v2882_v37 = vpop.eup %2881 }
 0x93b   :  { %582 = vrot.lane.b32.xlu0 %v2882_v37, %s2937_s3  ;;  %v578_v38 = vmul.f32 0.5, %v2882_v37 }
 0x93d   :  { %v579_v40 = vadd.f32 0.5, %v578_v38 }
 0x93f   :  { %v580_v43 = vmul.f32 %v579_v40, %v488_v23  ;;  %v1020_v23 = vld [vmem:[#allocation3] sm:$0xff] }
 0x9ad   :  { %v583_v41 = vpop.permute.xlu0 %582 }
 0x9ae   :  { %v585_v42 = vmul.f32 %v583_v41, %v579_v40 }
 0x9b0   :  { %587 = vrot.lane.b32.xlu1 %v585_v42, %s2937_s3 }
 0xa22   :  { %v588_v44 = vpop.permute.xlu1 %587 }
 0xa23   :  { %v590_v45 = vadd.f32 %v588_v44, %v580_v43 }
 0xa25   :  { %2883 = vtanh.f32 %v590_v45 }
 0xa2f   :  { %v2884_v46 = vpop.eup %2883 }
 0xa30   :  { %593 = vrot.lane.b32.xlu0 %v2884_v46, %s2937_s3 }
 0xaa2   :  { %v594_v24 = vpop.permute.xlu0 %593 }
 0xaa3   :  { %v596_v47 = vmul.f32 %v594_v24, %v579_v40 }
 0xaa5   :  { %598 = vrot.lane.b32.xlu1 %v596_v47, %s2938_s15 }
 0xb17   :  { %v599_v48 = vpop.permute.xlu1 %598 }
 0xb18   :  { %602 = vst.msk [vmem:[#allocation3 + $0x18] sm:$0xff] %vm196_vm3, %v599_v48  ;;  %2537 = vmatmul.mubr.msk.f32.vlgmr.msra.gmra.mrb[2].mxu0 %vm196_vm3, %v599_v48 }
 0xb19   :  { %2766 = vmatpush3.bf16.msra.mxu0 %v3008_v8  ;;  %2558 = vmatprep.mubr.msk.f32.mxu0 %vm2934_vm1, %v2935_v4 }
 0xb1a   :  { %2767 = vmatprep.subr.bf16.mxu0 %v2933_v3 }
 0xb1d   :  { %2769 = vmatpush3.bf16.msra.mxu0 %v3026_v13 }
 0xb1f   :  { %v1023_v27 = vld [vmem:[#allocation3 + $0x18] sm:$0xff] }
 0xbeb   :  { %v673_v49 = vpop.f32.mrb[2].mxu0 }
 0xbec   :  { %v677_v50 = vadd.f32 %v673_v49, %v3073_v32  ;;  %v2538_v51 = vpop.f32.mrb[3].mxu0 }
 0xbee   :  { %v678_v52 = vmul.f32 %v677_v50, %v3079_v39 }
 0xbf0   :  { %2885 = vtanh.f32 %v678_v52  ;;  %v1015_v52 = vld [vmem:[%s3427_s5] sm:$0xff] }
 0xbfa   :  { %v2886_v53 = vpop.eup %2885 }
 0xbfb   :  { %684 = vrot.lane.b32.xlu0 %v2886_v53, %s2937_s3  ;;  %v680_v54 = vmul.f32 0.5, %v2886_v53  ;;  %v1016_v53 = vld [vmem:[%s3427_s5 + $0x8] sm:$0xff] }
 0xbfd   :  { %v681_v55 = vadd.f32 0.5, %v680_v54  ;;  %v3199_v54 = vpack.c.bf16 %v1016_v53, %v1015_v52 }
 0xbff   :  { %v682_v58 = vmul.f32 %v681_v55, %v590_v45 }
 0xc6d   :  { %v685_v56 = vpop.permute.xlu0 %684 }
 0xc6e   :  { %v687_v57 = vmul.f32 %v685_v56, %v681_v55  ;;  %v1018_v56 = vld [vmem:[%s3427_s5 + $0x18] sm:$0xff] }
 0xc70   :  { %689 = vrot.lane.b32.xlu1 %v687_v57, %s2937_s3 }
 0xce2   :  { %v690_v59 = vpop.permute.xlu1 %689 }
 0xce3   :  { %v692_v60 = vadd.f32 %v690_v59, %v682_v58 }
 0xce5   :  { %2887 = vtanh.f32 %v692_v60 }
 0xcef   :  { %v2888_v61 = vpop.eup %2887 }
 0xcf0   :  { %695 = vrot.lane.b32.xlu0 %v2888_v61, %s2937_s3 }
 0xd62   :  { %v696_v32 = vpop.permute.xlu0 %695 }
 0xd63   :  { %v698_v62 = vmul.f32 %v696_v32, %v681_v55  ;;  %v1017_v55 = vld [vmem:[%s3427_s5 + $0x10] sm:$0xff] }
 0xd64   :  { %v3209_v57 = vpack.c.bf16 %v1018_v56, %v1017_v55 }
 0xd65   :  { %700 = vrot.lane.b32.xlu1 %v698_v62, %s2938_s15 }
 0xdd7   :  { %v701_v63 = vpop.permute.xlu1 %700 }
 0xdd8   :  { %704 = vst.msk [vmem:[#allocation3 + $0x20] sm:$0xff] %vm196_vm3, %v701_v63  ;;  %2548 = vmatmul.mubr.msk.f32.vlgmr.msra.gmra.mrb[14].mxu1 %vm196_vm3, %v701_v63 }
 0xdd9   :  { %2772 = vmatpush3.bf16.msra.mxu1 %v3008_v8  ;;  %2569 = vmatprep.mubr.msk.f32.mxu1 %vm2934_vm1, %v2935_v4 }
 0xdda   :  { %2773 = vmatprep.subr.bf16.mxu1 %v2933_v3 }
 0xddd   :  { %2775 = vmatpush3.bf16.msra.mxu1 %v3026_v13 }
 0xdde   :  { %2784 = vmatprep.subr.bf16.mxu1 %v2933_v3 }
 0xddf   :  { %v1024_v28 = vld [vmem:[#allocation3 + $0x20] sm:$0xff] }
 0xeab   :  { %v775_v0 = vpop.f32.mrb[14].mxu1 }
 0xeac   :  { %v779_v1 = vadd.f32 %v775_v0, %v3071_v29  ;;  %v2549_v2 = vpop.f32.mrb[15].mxu1  ;;  %v1011_v29 = vld [vmem:[%s3426_s4] sm:$0xff] }
 0xead   :  { %v2776_v15 = vpack.c.bf16 %v1012_v14, %v1011_v29  ;;  %v3234_v0 = vld [vmem:[%s3428_s6] ss:$0 sm:$0xff] }
 0xeae   :  { %v780_v5 = vmul.f32 %v779_v1, %v3079_v39 }
 0xeaf   :  { %2777 = vmatprep.subr.bf16.mxu0 %v2776_v15 }
 0xeb0   :  { %2889 = vtanh.f32 %v780_v5 }
 0xeba   :  { %v2890_v6 = vpop.eup %2889 }
 0xebb   :  { %786 = vrot.lane.b32.xlu0 %v2890_v6, %s2937_s3  ;;  %v782_v8 = vmul.f32 0.5, %v2890_v6 }
 0xebd   :  { %v783_v7 = vadd.f32 0.5, %v782_v8 }
 0xebf   :  { %v784_v11 = vmul.f32 %v783_v7, %v692_v60 }
 0xf2d   :  { %v787_v9 = vpop.permute.xlu0 %786 }
 0xf2e   :  { %v789_v10 = vmul.f32 %v787_v9, %v783_v7 }
 0xf30   :  { %791 = vrot.lane.b32.xlu1 %v789_v10, %s2937_s3 }
 0xfa2   :  { %v792_v13 = vpop.permute.xlu1 %791 }
 0xfa3   :  { %v794_v12 = vadd.f32 %v792_v13, %v784_v11 }
 0xfa5   :  { %2891 = vtanh.f32 %v794_v12 }
 0xfaf   :  { %v2892_v16 = vpop.eup %2891 }
 0xfb0   :  { %797 = vrot.lane.b32.xlu0 %v2892_v16, %s2937_s3 }
0x1022   :  { %v798_v17 = vpop.permute.xlu0 %797 }
0x1023   :  { %v800_v18 = vmul.f32 %v798_v17, %v783_v7 }
0x1025   :  { %802 = vrot.lane.b32.xlu1 %v800_v18, %s2938_s15 }
0x1097   :  { %v803_v22 = vpop.permute.xlu1 %802 }
0x1098   :  { %806 = vst.msk [vmem:[#allocation3 + $0x28] sm:$0xff] %vm196_vm3, %v803_v22  ;;  %2559 = vmatmul.mubr.msk.f32.vlgmr.msra.gmra.mrb[4].mxu0 %vm196_vm3, %v803_v22 }
0x1099   :  { %2779 = vmatpush3.bf16.msra.mxu0 %v2776_v15  ;;  %2580 = vmatprep.mubr.msk.f32.mxu0 %vm196_vm3, %v1020_v23 }
0x109a   :  { %2781 = vmatprep.subr.bf16.mxu0 %v2780_v21 }
0x109d   :  { %2783 = vmatpush3.bf16.msra.mxu0 %v2780_v21 }
0x109e   :  { %2796 = vmatprep.subr.bf16.mxu0 %v2933_v3 }
0x109f   :  { %v1025_v30 = vld [vmem:[#allocation3 + $0x28] sm:$0xff] }
0x10a0   :  { %2581 = vmatmul.mubr.msk.f32.vlgmr.msra.gmra.mrb[6].mxu0 %vm196_vm3, %v1021_v25 }
0x10a1   :  { %2583 = vmatprep.mubr.msk.f32.mxu0 %vm196_vm3, %v1022_v26  ;;  %2798 = vmatpush3.bf16.msra.mxu0 %v3199_v54 }
0x10a2   :  { %2799 = vmatprep.subr.bf16.mxu0 %v2933_v3 }
0x10a4   :  { %2584 = vmatmul.mubr.msk.f32.gmra.mrb[8].mxu0 %vm196_vm3, %v1023_v27 }
0x10a5   :  { %2586 = vmatprep.mubr.msk.f32.mxu0 %vm196_vm3, %v1024_v28  ;;  %2801 = vmatpush3.bf16.msra.mxu0 %v3209_v57 }
0x10a6   :  { %2808 = vmatprep.subr.bf16.mxu0 %v2933_v3 }
0x10a8   :  { %2587 = vmatmul.mubr.msk.f32.gmra.mrb[10].mxu0 %vm196_vm3, %v1025_v30 }
0x116b   :  { %v877_v31 = vpop.f32.mrb[4].mxu0 }
0x116c   :  { %v881_v33 = vadd.f32 %v877_v31, %v3077_v36  ;;  %v2560_v35 = vpop.f32.mrb[5].mxu0 }
0x116e   :  { %v882_v37 = vmul.f32 %v881_v33, %v3079_v39 }
0x1170   :  { %2893 = vtanh.f32 %v882_v37 }
0x1173   :  { %v3177_v38 = vpop.f32.mrb[6].mxu0 }
0x1174   :  { %v1124_v40 = vpop.f32.mrb[7].mxu0  ;;  %v1130_v33 = vadd.f32 %v3177_v38, %v3234_v0 }
0x1175   :  { %v1125_v1 = vadd.f32 %v3234_v0, %v1124_v40 }
0x1177   :  { %v3179_v41 = vpop.f32.mrb[8].mxu0 }
0x1178   :  { %v3181_v42 = vpop.f32.mrb[9].mxu0 }
0x117a   :  { %v2894_v43 = vpop.eup %2893 }
0x117b   :  { %v3183_v44 = vpop.f32.mrb[10].mxu0  ;;  %888 = vrot.lane.b32.xlu0 %v2894_v43, %s2937_s3  ;;  %v884_v46 = vmul.f32 0.5, %v2894_v43 }
0x117c   :  { %v3186_v45 = vpop.f32.mrb[11].mxu0 }
0x117d   :  { %v885_v36 = vadd.f32 0.5, %v884_v46 }
0x117f   :  { %v886_v48 = vmul.f32 %v885_v36, %v794_v12 }
0x11ed   :  { %v889_v24 = vpop.permute.xlu0 %888 }
0x11ee   :  { %v891_v47 = vmul.f32 %v889_v24, %v885_v36 }
0x11f0   :  { %893 = vrot.lane.b32.xlu1 %v891_v47, %s2937_s3 }
0x1262   :  { %v894_v49 = vpop.permute.xlu1 %893 }
0x1263   :  { %v3189_v50 = vadd.f32 %v894_v49, %v886_v48 }
0x1265   :  { %2895 = vtanh.f32 %v3189_v50 }
0x126f   :  { %v2896_v51 = vpop.eup %2895 }
0x1270   :  { %899 = vrot.lane.b32.xlu0 %v2896_v51, %s2937_s3 }
0x12e2   :  { %v900_v58 = vpop.permute.xlu0 %899 }
0x12e3   :  { %v902_v59 = vmul.f32 %v900_v58, %v885_v36 }
0x12e5   :  { %904 = vrot.lane.b32.xlu1 %v902_v59, %s2938_s15 }
0x1357   :  { %v905_v60 = vpop.permute.xlu1 %904 }
0x1358   :  { %908 = vst.msk [vmem:[#allocation3 + $0x30] sm:$0xff] %vm196_vm3, %v905_v60  ;;  %2570 = vmatmul.mubr.msk.f32.vlgmr.msra.gmra.mrb[16].mxu1 %vm196_vm3, %v905_v60 }
0x1359   :  { %2786 = vmatpush3.bf16.msra.mxu1 %v3199_v54  ;;  %2600 = vmatprep.mubr.msk.f32.mxu1 %vm2934_vm1, %v2935_v4 }
0x135a   :  { %2787 = vmatprep.subr.bf16.mxu1 %v2933_v3 }
0x135d   :  { %2789 = vmatpush3.bf16.msra.mxu1 %v3209_v57 }
0x135e   :  { %2790 = vmatprep.subr.bf16.mxu1 %v2933_v3 }
0x135f   :  { %v1026_v61 = vld [vmem:[#allocation3 + $0x30] sm:$0xff] }
0x1360   :  { %2601 = vmatmul.mubr.f32.vlgmr.msra.gmra.mrb[18].mxu1 %v2935_v4  ;;  %2589 = vmatprep.mubr.msk.f32.mxu0 %vm196_vm3, %v1026_v61  ;;  %v1135_v61 = vadd.f32 %v3234_v0, %v3181_v42 }
0x1361   :  { %2792 = vmatpush3.bf16.msra.mxu1 %v3199_v54  ;;  %2611 = vmatprep.mubr.msk.f32.mxu1 %vm2934_vm1, %v2935_v4 }
0x1362   :  { %2793 = vmatprep.subr.bf16.mxu1 %v2933_v3 }
0x1365   :  { %2795 = vmatpush3.bf16.msra.mxu1 %v3209_v57 }
0x1366   :  { %2802 = vmatprep.subr.bf16.mxu1 %v2933_v3 }
0x142b   :  { %v979_v32 = vpop.f32.mrb[16].mxu1 }
0x142c   :  { %v983_v62 = vadd.f32 %v979_v32, %v3075_v34  ;;  %v2571_v63 = vpop.f32.mrb[17].mxu1 }
0x142e   :  { %v984_v14 = vmul.f32 %v983_v62, %v3079_v39 }
0x1433   :  { %v1238_v2 = vpop.f32.mrb[18].mxu1 }
0x1434   :  { %v1242_v5 = vadd.f32 %v1238_v2, %v1125_v1  ;;  %v2602_v6 = vpop.f32.mrb[19].mxu1 }
0x1436   :  { %v1243_v8 = vmul.f32 %v1242_v5, %v3079_v39 }
0x1438   :  { %2897 = vtanh.f32 %v1243_v8 }
0x1442   :  { %v2898_v7 = vpop.eup %2897 }
0x1443   :  { %1249 = vrot.lane.b32.xlu0 %v2898_v7, %s2937_s3  ;;  %v1245_v9 = vmul.f32 0.5, %v2898_v7 }
0x1445   :  { %v1246_v10 = vadd.f32 0.5, %v1245_v9 }
0x1447   :  { %v1247_v13 = vmul.f32 0.0, %v1246_v10 }
0x14b5   :  { %v1250_v34 = vpop.permute.xlu0 %1249 }
0x14b6   :  { %v1252_v11 = vmul.f32 %v1250_v34, %v1246_v10 }
0x14b8   :  { %1254 = vrot.lane.b32.xlu1 %v1252_v11, %s2937_s3 }
0x152a   :  { %v1255_v12 = vpop.permute.xlu1 %1254 }
0x152b   :  { %v1257_v29 = vadd.f32 %v1255_v12, %v1247_v13 }
0x152d   :  { %2899 = vtanh.f32 %v1257_v29 }
0x152e   :  { %2901 = vtanh.f32 %v984_v14 }
0x1537   :  { %v2900_v15 = vpop.eup %2899 }
0x1538   :  { %1260 = vrot.lane.b32.xlu0 %v2900_v15, %s2937_s3  ;;  %v2902_v16 = vpop.eup %2901 }
0x1539   :  { %v986_v17 = vmul.f32 0.5, %v2902_v16 }
0x153b   :  { %v987_v20 = vadd.f32 0.5, %v986_v17 }
0x153c   :  { %990 = vrot.lane.b32.xlu0 %v2902_v16, %s2937_s3 }
0x153d   :  { %v988_v25 = vmul.f32 %v987_v20, %v3189_v50 }
0x15aa   :  { %v1261_v18 = vpop.permute.xlu0 %1260 }
0x15ab   :  { %v1263_v19 = vmul.f32 %v1261_v18, %v1246_v10 }
0x15ad   :  { %1265 = vrot.lane.b32.xlu1 %v1263_v19, %s2938_s15 }
0x15ae   :  { %v991_v21 = vpop.permute.xlu0 %990 }
0x15af   :  { %v993_v22 = vmul.f32 %v991_v21, %v987_v20 }
0x15b1   :  { %995 = vrot.lane.b32.xlu0 %v993_v22, %s2937_s3 }
0x161f   :  { %v1266_v23 = vpop.permute.xlu1 %1265 }
0x1620   :  { %1268 = vst.msk [vmem:[#allocation3] sm:$0xff] %vm196_vm3, %v1266_v23  ;;  %2612 = vmatmul.mubr.msk.f32.vlgmr.msra.gmra.mrb[20].mxu1 %vm196_vm3, %v1266_v23 }
0x1621   :  { %2804 = vmatpush3.bf16.msra.mxu1 %v3199_v54  ;;  %2633 = vmatprep.mubr.msk.f32.mxu1 %vm2934_vm1, %v2935_v4 }
0x1622   :  { %2805 = vmatprep.subr.bf16.mxu1 %v2933_v3 }
0x1623   :  { %v996_v26 = vpop.permute.xlu0 %995 }
0x1624   :  { %v998_v27 = vadd.f32 %v996_v26, %v988_v25 }
0x1625   :  { %2807 = vmatpush3.bf16.msra.mxu1 %v3209_v57 }
0x1626   :  { %2903 = vtanh.f32 %v998_v27  ;;  %2814 = vmatprep.subr.bf16.mxu1 %v2933_v3 }
0x1630   :  { %v2904_v28 = vpop.eup %2903 }
0x1631   :  { %1001 = vrot.lane.b32.xlu0 %v2904_v28, %s2937_s3 }
0x16a3   :  { %v1002_v30 = vpop.permute.xlu0 %1001 }
0x16a4   :  { %v1004_v31 = vmul.f32 %v1002_v30, %v987_v20 }
0x16a6   :  { %1006 = vrot.lane.b32.xlu0 %v1004_v31, %s2938_s15  ;;  %v1145_v31 = vadd.f32 %v3234_v0, %v3186_v45 }
0x16f3   :  { %v1338_v35 = vpop.f32.mrb[20].mxu1 }
0x16f4   :  { %v1342_v37 = vadd.f32 %v1338_v35, %v1130_v33  ;;  %v2613_v40 = vpop.f32.mrb[21].mxu1 }
0x16f6   :  { %v1343_v43 = vmul.f32 %v1342_v37, %v3079_v39 }
0x16f8   :  { %2905 = vtanh.f32 %v1343_v43 }
0x1702   :  { %v2906_v46 = vpop.eup %2905 }
0x1703   :  { %1349 = vrot.lane.b32.xlu1 %v2906_v46, %s2937_s3  ;;  %v1345_v47 = vmul.f32 0.5, %v2906_v46 }
0x1705   :  { %v1346_v38 = vadd.f32 0.5, %v1345_v47 }
0x1707   :  { %v1347_v50 = vmul.f32 %v1346_v38, %v1257_v29  ;;  %v1140_v29 = vadd.f32 %v3179_v41, %v3234_v0 }
0x1718   :  { %v1007_v36 = vpop.permute.xlu0 %1006 }
0x1719   :  { %1010 = vst.msk [vmem:[#allocation3 + $0x38] sm:$0xff] %vm196_vm3, %v1007_v36 }
0x1720   :  { %v1027_v24 = vld [vmem:[#allocation3 + $0x38] sm:$0xff] }
0x1721   :  { %2590 = vmatmul.mubr.msk.f32.gmra.mrb[12].mxu0 %vm196_vm3, %v1027_v24 }
0x1722   :  { %2622 = vmatprep.mubr.msk.f32.mxu0 %vm2934_vm1, %v2935_v4 }
0x1775   :  { %v1350_v48 = vpop.permute.xlu1 %1349 }
0x1776   :  { %v1352_v49 = vmul.f32 %v1350_v48, %v1346_v38 }
0x1778   :  { %1354 = vrot.lane.b32.xlu1 %v1352_v49, %s2937_s3 }
0x17ea   :  { %v1355_v51 = vpop.permute.xlu1 %1354 }
0x17eb   :  { %v1357_v52 = vadd.f32 %v1355_v51, %v1347_v50 }
0x17ed   :  { %2907 = vtanh.f32 %v1357_v52 }
0x17f4   :  { %v3265_v53 = vpop.f32.mrb[12].mxu0 }
0x17f5   :  { %v3267_v55 = vpop.f32.mrb[13].mxu0 }
0x17f7   :  { %v2908_v56 = vpop.eup %2907 }
0x17f8   :  { %1360 = vrot.lane.b32.xlu1 %v2908_v56, %s2937_s3  ;;  %v1150_v56 = vadd.f32 %v3183_v44, %v3234_v0 }
0x186a   :  { %v1361_v58 = vpop.permute.xlu1 %1360 }
0x186b   :  { %v1363_v59 = vmul.f32 %v1361_v58, %v1346_v38 }
0x186d   :  { %1365 = vrot.lane.b32.xlu1 %v1363_v59, %s2938_s15 }
0x18df   :  { %v1366_v60 = vpop.permute.xlu1 %1365 }
0x18e0   :  { %1368 = vst.msk [vmem:[#allocation3 + $0x8] sm:$0xff] %vm196_vm3, %v1366_v60  ;;  %2623 = vmatmul.mubr.msk.f32.vlgmr.msra.gmra.mrb[14].mxu0 %vm196_vm3, %v1366_v60 }
0x18e1   :  { %2810 = vmatpush3.bf16.msra.mxu0 %v3199_v54  ;;  %2644 = vmatprep.mubr.msk.f32.mxu0 %vm2934_vm1, %v2935_v4 }
0x18e2   :  { %2811 = vmatprep.subr.bf16.mxu0 %v2933_v3 }
0x18e5   :  { %2813 = vmatpush3.bf16.msra.mxu0 %v3209_v57 }
0x18e6   :  { %2820 = vmatprep.subr.bf16.mxu0 %v2933_v3 }
0x19b3   :  { %v1438_v32 = vpop.f32.mrb[14].mxu0 }
0x19b4   :  { %v1442_v62 = vadd.f32 %v1438_v32, %v1135_v61  ;;  %v2624_v63 = vpop.f32.mrb[15].mxu0 }
0x19b6   :  { %v1443_v1 = vmul.f32 %v1442_v62, %v3079_v39 }
0x19b8   :  { %2909 = vtanh.f32 %v1443_v1 }
0x19c2   :  { %v2910_v2 = vpop.eup %2909 }
0x19c3   :  { %1449 = vrot.lane.b32.xlu0 %v2910_v2, %s2937_s3  ;;  %v1445_v5 = vmul.f32 0.5, %v2910_v2 }
0x19c5   :  { %v1446_v6 = vadd.f32 0.5, %v1445_v5 }
0x19c7   :  { %v1447_v9 = vmul.f32 %v1446_v6, %v1357_v52 }
0x1a35   :  { %v1450_v8 = vpop.permute.xlu0 %1449 }
0x1a36   :  { %v1452_v7 = vmul.f32 %v1450_v8, %v1446_v6 }
0x1a38   :  { %1454 = vrot.lane.b32.xlu1 %v1452_v7, %s2937_s3 }
0x1aaa   :  { %v1455_v10 = vpop.permute.xlu1 %1454 }
0x1aab   :  { %v1457_v34 = vadd.f32 %v1455_v10, %v1447_v9  ;;  %v1155_v9 = vadd.f32 %v3234_v0, %v3267_v55 }
0x1aad   :  { %2911 = vtanh.f32 %v1457_v34 }
0x1ab7   :  { %v2912_v42 = vpop.eup %2911 }
0x1ab8   :  { %1460 = vrot.lane.b32.xlu0 %v2912_v42, %s2937_s3 }
0x1b2a   :  { %v1461_v11 = vpop.permute.xlu0 %1460 }
0x1b2b   :  { %v1463_v13 = vmul.f32 %v1461_v11, %v1446_v6 }
0x1b2d   :  { %1465 = vrot.lane.b32.xlu1 %v1463_v13, %s2938_s15 }
0x1b9f   :  { %v1466_v12 = vpop.permute.xlu1 %1465 }
0x1ba0   :  { %1468 = vst.msk [vmem:[#allocation3 + $0x10] sm:$0xff] %vm196_vm3, %v1466_v12  ;;  %2634 = vmatmul.mubr.msk.f32.vlgmr.msra.gmra.mrb[22].mxu1 %vm196_vm3, %v1466_v12 }
0x1ba1   :  { %2816 = vmatpush3.bf16.msra.mxu1 %v3199_v54  ;;  %2655 = vmatprep.mubr.msk.f32.mxu1 %vm2934_vm1, %v2935_v4 }
0x1ba2   :  { %2817 = vmatprep.subr.bf16.mxu1 %v2933_v3 }
0x1ba5   :  { %2819 = vmatpush3.bf16.msra.mxu1 %v3209_v57 }
0x1ba6   :  { %2826 = vmatprep.subr.bf16.mxu1 %v2933_v3 }
0x1c73   :  { %v1538_v14 = vpop.f32.mrb[22].mxu1 }
0x1c74   :  { %v1542_v15 = vadd.f32 %v1538_v14, %v1140_v29  ;;  %v2635_v16 = vpop.f32.mrb[23].mxu1 }
0x1c76   :  { %v1543_v17 = vmul.f32 %v1542_v15, %v3079_v39 }
0x1c78   :  { %2913 = vtanh.f32 %v1543_v17 }
0x1c82   :  { %v2914_v18 = vpop.eup %2913 }
0x1c83   :  { %1549 = vrot.lane.b32.xlu0 %v2914_v18, %s2937_s3  ;;  %v1545_v19 = vmul.f32 0.5, %v2914_v18 }
0x1c85   :  { %v1546_v20 = vadd.f32 0.5, %v1545_v19 }
0x1c87   :  { %v1547_v23 = vmul.f32 %v1546_v20, %v1457_v34 }
0x1cf5   :  { %v1550_v21 = vpop.permute.xlu0 %1549 }
0x1cf6   :  { %v1552_v22 = vmul.f32 %v1550_v21, %v1546_v20 }
0x1cf8   :  { %1554 = vrot.lane.b32.xlu1 %v1552_v22, %s2937_s3  ;;  %v1160_v22 = vadd.f32 %v3265_v53, %v3234_v0  ;;  %v1981_v53 = vld [vmem:[%s3429_s7 + $0x8] sm:$0xff] }
0x1d6a   :  { %v1555_v25 = vpop.permute.xlu1 %1554 }
0x1d6b   :  { %v1557_v26 = vadd.f32 %v1555_v25, %v1547_v23 }
0x1d6d   :  { %2915 = vtanh.f32 %v1557_v26 }
0x1d77   :  { %v2916_v41 = vpop.eup %2915 }
0x1d78   :  { %1560 = vrot.lane.b32.xlu0 %v2916_v41, %s2937_s3 }
0x1dea   :  { %v1561_v27 = vpop.permute.xlu0 %1560 }
0x1deb   :  { %v1563_v28 = vmul.f32 %v1561_v27, %v1546_v20 }
0x1ded   :  { %1565 = vrot.lane.b32.xlu1 %v1563_v28, %s2938_s15 }
0x1e5f   :  { %v1566_v30 = vpop.permute.xlu1 %1565 }
0x1e60   :  { %1568 = vst.msk [vmem:[#allocation3 + $0x18] sm:$0xff] %vm196_vm3, %v1566_v30  ;;  %2645 = vmatmul.mubr.msk.f32.vlgmr.msra.gmra.mrb[16].mxu0 %vm196_vm3, %v1566_v30 }
0x1e61   :  { %2822 = vmatpush3.bf16.msra.mxu0 %v3199_v54  ;;  %2666 = vmatprep.mubr.msk.f32.mxu0 %vm2934_vm1, %v2935_v4 }
0x1e62   :  { %2823 = vmatprep.subr.bf16.mxu0 %v2933_v3 }
0x1e65   :  { %2825 = vmatpush3.bf16.msra.mxu0 %v3209_v57 }
0x1e66   :  { %2832 = vmatprep.subr.bf16.mxu0 %v2933_v3 }
0x1f33   :  { %v1638_v33 = vpop.f32.mrb[16].mxu0 }
0x1f34   :  { %v1642_v35 = vadd.f32 %v1638_v33, %v1145_v31  ;;  %v2646_v37 = vpop.f32.mrb[17].mxu0 }
0x1f36   :  { %v1643_v40 = vmul.f32 %v1642_v35, %v3079_v39 }
0x1f38   :  { %2917 = vtanh.f32 %v1643_v40 }
0x1f42   :  { %v2918_v43 = vpop.eup %2917 }
0x1f43   :  { %1649 = vrot.lane.b32.xlu0 %v2918_v43, %s2937_s3  ;;  %v1645_v46 = vmul.f32 0.5, %v2918_v43  ;;  %v1982_v43 = vld [vmem:[%s3429_s7 + $0x10] sm:$0xff] }
0x1f45   :  { %v1646_v36 = vadd.f32 0.5, %v1645_v46 }
0x1f47   :  { %v1647_v38 = vmul.f32 %v1646_v36, %v1557_v26 }
0x1fb5   :  { %v1650_v24 = vpop.permute.xlu0 %1649 }
0x1fb6   :  { %v1652_v47 = vmul.f32 %v1650_v24, %v1646_v36 }
0x1fb8   :  { %1654 = vrot.lane.b32.xlu1 %v1652_v47, %s2937_s3 }
0x202a   :  { %v1655_v48 = vpop.permute.xlu1 %1654 }
0x202b   :  { %v1657_v49 = vadd.f32 %v1655_v48, %v1647_v38 }
0x202d   :  { %2919 = vtanh.f32 %v1657_v49 }
0x2037   :  { %v2920_v45 = vpop.eup %2919 }
0x2038   :  { %1660 = vrot.lane.b32.xlu0 %v2920_v45, %s2937_s3  ;;  %v2063_v45 = vld [vmem:[%s3429_s7 + $0x28] sm:$0xff] }
0x20aa   :  { %v1661_v50 = vpop.permute.xlu0 %1660 }
0x20ab   :  { %v1663_v51 = vmul.f32 %v1661_v50, %v1646_v36  ;;  %v1983_v36 = vld [vmem:[%s3429_s7 + $0x18] sm:$0xff] }
0x20ac   :  { %v2836_v24 = vpack.c.bf16 %v1983_v36, %v1982_v43  ;;  %v1977_v50 = vld [vmem:[#allocation3] ss:$8 sm:$0xf] }
0x20ad   :  { %1665 = vrot.lane.b32.xlu1 %v1663_v51, %s2938_s15 }
0x211f   :  { %v1666_v52 = vpop.permute.xlu1 %1665 }
0x2120   :  { %1668 = vst.msk [vmem:[#allocation3 + $0x20] sm:$0xff] %vm196_vm3, %v1666_v52  ;;  %2656 = vmatmul.mubr.msk.f32.vlgmr.msra.gmra.mrb[24].mxu1 %vm196_vm3, %v1666_v52 }
0x2121   :  { %2828 = vmatpush3.bf16.msra.mxu1 %v3199_v54  ;;  %2677 = vmatprep.mubr.msk.f32.mxu1 %vm2934_vm1, %v2935_v4 }
0x2122   :  { %2829 = vmatprep.subr.bf16.mxu1 %v2933_v3 }
0x2125   :  { %2831 = vmatpush3.bf16.msra.mxu1 %v3209_v57 }
0x21f3   :  { %v1738_v58 = vpop.f32.mrb[24].mxu1 }
0x21f4   :  { %v1742_v59 = vadd.f32 %v1738_v58, %v1150_v56  ;;  %v2657_v60 = vpop.f32.mrb[25].mxu1  ;;  %v2064_v58 = vld [vmem:[%s3429_s7 + $0x30] sm:$0xff] }
0x21f6   :  { %v1743_v61 = vmul.f32 %v1742_v59, %v3079_v39  ;;  %v2065_v59 = vld [vmem:[%s3429_s7 + $0x38] sm:$0xff] }
0x21f7   :  { %v2842_v60 = vpack.c.bf16 %v2065_v59, %v2064_v58 }
0x21f8   :  { %2921 = vtanh.f32 %v1743_v61  ;;  %v2144_v61 = vld [vmem:[%s3429_s7 + $0x40] sm:$0xff] }
0x2202   :  { %v2922_v32 = vpop.eup %2921 }
0x2203   :  { %1749 = vrot.lane.b32.xlu0 %v2922_v32, %s2937_s3  ;;  %v1745_v54 = vmul.f32 0.5, %v2922_v32  ;;  %v2145_v32 = vld [vmem:[%s3429_s7 + $0x48] sm:$0xff] }
0x2205   :  { %v1746_v62 = vadd.f32 0.5, %v1745_v54 }
0x2207   :  { %v1747_v2 = vmul.f32 %v1746_v62, %v1657_v49  ;;  %v2062_v49 = vld [vmem:[%s3429_s7 + $0x20] sm:$0xff] }
0x2208   :  { %v2839_v52 = vpack.c.bf16 %v2063_v45, %v2062_v49 }
0x2275   :  { %v1750_v63 = vpop.permute.xlu0 %1749 }
0x2276   :  { %v1752_v1 = vmul.f32 %v1750_v63, %v1746_v62  ;;  %v2845_v63 = vpack.c.bf16 %v2145_v32, %v2144_v61 }
0x2278   :  { %1754 = vrot.lane.b32.xlu1 %v1752_v1, %s2937_s3 }
0x22ea   :  { %v1755_v57 = vpop.permute.xlu1 %1754 }
0x22eb   :  { %v1757_v5 = vadd.f32 %v1755_v57, %v1747_v2  ;;  %v2146_v2 = vld [vmem:[%s3429_s7 + $0x50] sm:$0xff]  ;;  %v2147_v57 = vld [vmem:[%s3429_s7 + $0x58] sm:$0xff] }
0x22ed   :  { %2923 = vtanh.f32 %v1757_v5 }
0x22f7   :  { %v2924_v44 = vpop.eup %2923 }
0x22f8   :  { %1760 = vrot.lane.b32.xlu0 %v2924_v44, %s2937_s3  ;;  %v2226_v44 = vld [vmem:[%s3429_s7 + $0x60] sm:$0xff] }
0x236a   :  { %v1761_v6 = vpop.permute.xlu0 %1760 }
0x236b   :  { %v1763_v8 = vmul.f32 %v1761_v6, %v1746_v62  ;;  %v2059_v62 = vld [vmem:[#allocation3 + $0x1] ss:$8 sm:$0xf] }
0x236c   :  { %v2227_v6 = vld [vmem:[%s3429_s7 + $0x68] sm:$0xff] }
0x236d   :  { %1765 = vrot.lane.b32.xlu1 %v1763_v8, %s2938_s15 }
0x23df   :  { %v1766_v7 = vpop.permute.xlu1 %1765 }
0x23e0   :  { %1768 = vst.msk [vmem:[#allocation3 + $0x28] sm:$0xff] %vm196_vm3, %v1766_v7  ;;  %2667 = vmatmul.mubr.msk.f32.vlgmr.msra.gmra.mrb[18].mxu0 %vm196_vm3, %v1766_v7  ;;  %v2141_v7 = vld [vmem:[#allocation3 + $0x2] ss:$8 sm:$0xf] }
0x23e1   :  { %2688 = vmatprep.mubr.msk.f32.mxu0 %vm2934_vm1, %v2935_v4 }
0x24b3   :  { %v1838_v10 = vpop.f32.mrb[18].mxu0 }
0x24b4   :  { %v1842_v34 = vadd.f32 %v1838_v10, %v1155_v9  ;;  %v2668_v42 = vpop.f32.mrb[19].mxu0  ;;  %v2851_v9 = vpack.c.bf16 %v2227_v6, %v2226_v44 }
0x24b5   :  { %v2229_v42 = vld [vmem:[%s3429_s7 + $0x78] sm:$0xff] }
0x24b6   :  { %v1843_v11 = vmul.f32 %v1842_v34, %v3079_v39  ;;  %v2228_v34 = vld [vmem:[%s3429_s7 + $0x70] sm:$0xff] }
0x24b8   :  { %2925 = vtanh.f32 %v1843_v11  ;;  %v2854_v11 = vpack.c.bf16 %v2229_v42, %v2228_v34 }
0x24c2   :  { %v2926_v13 = vpop.eup %2925 }
0x24c3   :  { %1849 = vrot.lane.b32.xlu0 %v2926_v13, %s2937_s3  ;;  %v1845_v12 = vmul.f32 0.5, %v2926_v13 }
0x24c5   :  { %v1846_v29 = vadd.f32 0.5, %v1845_v12  ;;  %v2223_v12 = vld [vmem:[#allocation3 + $0x3] ss:$8 sm:$0xf] }
0x24c7   :  { %v1847_v16 = vmul.f32 %v1846_v29, %v1757_v5  ;;  %v2848_v5 = vpack.c.bf16 %v2147_v57, %v2146_v2 }
0x2535   :  { %v1850_v14 = vpop.permute.xlu0 %1849 }
0x2536   :  { %v1852_v15 = vmul.f32 %v1850_v14, %v1846_v29  ;;  %v2341_v14 = vld [vmem:[%s3430_s8] ss:$0 sm:$0xff] }
0x2538   :  { %1854 = vrot.lane.b32.xlu1 %v1852_v15, %s2937_s3 }
0x25aa   :  { %v1855_v17 = vpop.permute.xlu1 %1854 }
0x25ab   :  { %v1857_v18 = vadd.f32 %v1855_v17, %v1847_v16 }
0x25ad   :  { %2927 = vtanh.f32 %v1857_v18 }
0x25b7   :  { %v2928_v55 = vpop.eup %2927 }
0x25b8   :  { %1860 = vrot.lane.b32.xlu0 %v2928_v55, %s2937_s3 }
0x262a   :  { %v1861_v19 = vpop.permute.xlu0 %1860 }
0x262b   :  { %v1863_v20 = vmul.f32 %v1861_v19, %v1846_v29 }
0x262d   :  { %1865 = vrot.lane.b32.xlu1 %v1863_v20, %s2938_s15 }
0x269f   :  { %v1866_v21 = vpop.permute.xlu1 %1865 }
0x26a0   :  { %1868 = vst.msk [vmem:[#allocation3 + $0x30] sm:$0xff] %vm196_vm3, %v1866_v21  ;;  %2678 = vmatmul.mubr.msk.f32.vlgmr.msra.gmra.mrb[26].mxu1 %vm196_vm3, %v1866_v21 }
0x2773   :  { %v1938_v23 = vpop.f32.mrb[26].mxu1 }
0x2774   :  { %v1942_v25 = vadd.f32 %v1938_v23, %v1160_v22  ;;  %v2679_v26 = vpop.f32.mrb[27].mxu1 }
0x2776   :  { %v1943_v41 = vmul.f32 %v1942_v25, %v3079_v39  ;;  %v1980_v39 = vld [vmem:[%s3429_s7] sm:$0xff] }
0x2777   :  { %v2833_v46 = vpack.c.bf16 %v1981_v53, %v1980_v39 }
0x2778   :  { %2929 = vtanh.f32 %v1943_v41 }
0x2779   :  { %2834 = vmatpush3.bf16.msra.mxu0 %v2833_v46 }
0x277a   :  { %2835 = vmatprep.subr.bf16.mxu0 %v2933_v3 }
0x277d   :  { %2837 = vmatpush3.bf16.msra.mxu0 %v2836_v24 }
0x277e   :  { %2838 = vmatprep.subr.bf16.mxu0 %v2933_v3 }
0x2782   :  { %v2930_v27 = vpop.eup %2929 }
0x2783   :  { %1949 = vrot.lane.b32.xlu0 %v2930_v27, %s2937_s3  ;;  %v1945_v28 = vmul.f32 0.5, %v2930_v27 }
0x2785   :  { %v1946_v30 = vadd.f32 0.5, %v1945_v28 }
0x2787   :  { %v1947_v35 = vmul.f32 %v1946_v30, %v1857_v18 }
0x27f5   :  { %v1950_v31 = vpop.permute.xlu0 %1949 }
0x27f6   :  { %v1952_v33 = vmul.f32 %v1950_v31, %v1946_v30 }
0x27f8   :  { %1954 = vrot.lane.b32.xlu1 %v1952_v33, %s2937_s3 }
0x286a   :  { %v1955_v37 = vpop.permute.xlu1 %1954 }
0x286b   :  { %v1957_v40 = vadd.f32 %v1955_v37, %v1947_v35 }
0x286d   :  { %2931 = vtanh.f32 %v1957_v40 }
0x2877   :  { %v2932_v0 = vpop.eup %2931 }
0x2878   :  { %1960 = vrot.lane.b32.xlu0 %v2932_v0, %s2937_s3 }
0x28ea   :  { %v1961_v47 = vpop.permute.xlu0 %1960 }
0x28eb   :  { %v1963_v38 = vmul.f32 %v1961_v47, %v1946_v30 }
0x28ed   :  { %1965 = vrot.lane.b32.xlu1 %v1963_v38, %s2938_s15 }
0x295f   :  { %v1966_v48 = vpop.permute.xlu1 %1965 }
0x2960   :  { %1968 = vst.msk [vmem:[#allocation3 + $0x38] sm:$0xff] %vm196_vm3, %v1966_v48 }
0x2967   :  { %v1978_v51 = vld [vmem:[#allocation3] ss:$8 sm:$0xf0]  ;;  %v2060_v54 = vld [vmem:[#allocation3 + $0x1] ss:$8 sm:$0xf0] }
0x2968   :  { %v1979_v56 = vor.u32 %v1978_v51, %v1977_v50  ;;  %v2061_v1 = vor.u32 %v2060_v54, %v2059_v62  ;;  %v2142_v8 = vld [vmem:[#allocation3 + $0x2] ss:$8 sm:$0xf0]  ;;  %v2224_v13 = vld [vmem:[#allocation3 + $0x3] ss:$8 sm:$0xf0] }
0x2969   :  { %v2143_v10 = vor.u32 %v2142_v8, %v2141_v7  ;;  %v2225_v29 = vor.u32 %v2224_v13, %v2223_v12 }
0x296a   :  { %2689 = vmatmul.mubr.msk.f32.vlgmr.msra.gmra.mrb[20].mxu0 %vm196_vm3, %v1979_v56 }
0x296b   :  { %2840 = vmatpush3.bf16.msra.mxu0 %v2839_v52  ;;  %2699 = vmatprep.mubr.msk.f32.mxu0 %vm2934_vm1, %v2935_v4 }
0x296c   :  { %2841 = vmatprep.subr.bf16.mxu0 %v2933_v3 }
0x296f   :  { %2843 = vmatpush3.bf16.msra.mxu0 %v2842_v60 }
0x2970   :  { %2844 = vmatprep.subr.bf16.mxu0 %v2933_v3 }
0x2972   :  { %2700 = vmatmul.mubr.msk.f32.vlgmr.msra.gmra.mrb[20].mxu0 %vm196_vm3, %v2061_v1 }
0x2973   :  { %2846 = vmatpush3.bf16.msra.mxu0 %v2845_v63  ;;  %2710 = vmatprep.mubr.msk.f32.mxu0 %vm2934_vm1, %v2935_v4 }
0x2974   :  { %2847 = vmatprep.subr.bf16.mxu0 %v2933_v3 }
0x2977   :  { %2849 = vmatpush3.bf16.msra.mxu0 %v2848_v5 }
0x2978   :  { %2850 = vmatprep.subr.bf16.mxu0 %v2933_v3 }
0x297a   :  { %2711 = vmatmul.mubr.msk.f32.vlgmr.msra.gmra.mrb[20].mxu0 %vm196_vm3, %v2143_v10 }
0x297b   :  { %2852 = vmatpush3.bf16.msra.mxu0 %v2851_v9  ;;  %2721 = vmatprep.mubr.msk.f32.mxu0 %vm2934_vm1, %v2935_v4 }
0x297c   :  { %2853 = vmatprep.subr.bf16.mxu0 %v2933_v3 }
0x297f   :  { %2855 = vmatpush3.bf16.msra.mxu0 %v2854_v11 }
0x2982   :  { %2722 = vmatmul.mubr.msk.f32.vlgmr.msra.gmra.mrb[20].mxu0 %vm196_vm3, %v2225_v29 }
0x2a55   :  { %v2299_v15 = vpop.f32.mrb[20].mxu0 }
0x2a56   :  { %v2856_v16 = vadd.f32 %v2341_v14, %v2299_v15  ;;  %v2723_v17 = vpop.f32.mrb[21].mxu0 }
0x2a58   :  { %2304 = vst [vmem:[%s3431_s9] sm:$0xff] %v2856_v16 }

</bundles_post_ra>
